<compile_context>
chip_gen: v6e
topology: v6e:2x2x1
jax: 0.10.0
libtpu: 0.0.40
codegen_flags: <defaults>
</compile_context>

<pallas_src>
import functools

import jax
import jax.numpy as jnp
from jax import lax
from jax.experimental import pallas as pl
from jax.experimental.pallas import tpu as pltpu

NUM_ANCHORS = 3
NUM_CLASSES = 80
NO = NUM_CLASSES + 5            # 85
C_IN = 3
C_OUT = NUM_ANCHORS * NO        # 255


def _conv1x1_yolo_kernel(x_ref, w_ref, b_ref, o_ref):
    # x_ref: (B, Cin, HW)   w_ref: (A, Cin, NO)   b_ref: (A, 1, NO)   o_ref: (B, A, HW, NO)
    B = x_ref.shape[0]
    A = w_ref.shape[0]
    for b in range(B):                     # unrolled at trace time (B, A are tiny)
        x = x_ref[b]                       # (Cin, HW) -- lane-dense, ~4 vregs
        for a in range(A):
            # Contract over Cin (dim 0 of both operands): (Cin,HW) x (Cin,NO) -> (HW,NO)
            y = lax.dot_general(
                x, w_ref[a],
                dimension_numbers=(((0,), (0,)), ((), ())),
                preferred_element_type=jnp.float32,
            ) + b_ref[a]
            o_ref[b, a] = y                # store immediately -> bounded live range


def conv1x1_yolo_pallas(x_cin_hw: jax.Array, w_anchor: jax.Array,
                        b_anchor: jax.Array) -> jax.Array:
    """x_cin_hw: (B, Cin, HW) f32, w_anchor: (A, Cin, NO) f32, b_anchor: (A, 1, NO) f32
    -> (B, A, HW, NO) f32  (== (B, 3, H, W, 85) row-major once HW is split)."""
    B, cin, HW = x_cin_hw.shape
    A, _, no = w_anchor.shape

    # VMEM budget (lane-padded f32), double-buffered by the pipeliner.  Tiny today;
    # re-derive before growing B/HW on v7x (64 MiB physical, 32 MiB scoped default).
    padded_out_bytes = 4 * B * A * HW * ((no + 127) // 128) * 128
    padded_in_bytes = 4 * B * ((cin + 7) // 8) * 8 * ((HW + 127) // 128) * 128
    vmem_budget = 4 * (padded_out_bytes + padded_in_bytes) + (1 << 20)
    assert vmem_budget < (32 << 20), "working set no longer fits scoped VMEM defaults"

    cost = pl.CostEstimate(
        flops=2 * B * HW * cin * A * no,
        transcendentals=0,
        bytes_accessed=4 * (B * HW * cin + A * cin * no + A * no + B * A * HW * no),
    )

    return pl.pallas_call(
        _conv1x1_yolo_kernel,
        out_shape=jax.ShapeDtypeStruct((B, A, HW, no), jnp.float32),
        grid=(1,),  # single step: whole problem resident in VMEM, one contiguous output DMA
        in_specs=[
            pl.BlockSpec((B, cin, HW), lambda i: (0, 0, 0)),     # activations (full array)
            pl.BlockSpec((A, cin, no), lambda i: (0, 0, 0)),     # per-anchor weights
            pl.BlockSpec((A, 1, no), lambda i: (0, 0, 0)),       # per-anchor bias
        ],
        out_specs=pl.BlockSpec((B, A, HW, no), lambda i: (0, 0, 0, 0)),
        compiler_params=pltpu.CompilerParams(
            dimension_semantics=("arbitrary",),
            vmem_limit_bytes=max(vmem_budget, 16 << 20),
        ),
        cost_estimate=cost,
    )(x_cin_hw, w_anchor, b_anchor)


@functools.partial(jax.jit, static_argnames=("image_size",))
def model_forward(x_nchw: jax.Array, w_oc_ic: jax.Array, bias: jax.Array,
                  image_size: int = 20) -> jax.Array:
    """Full Model.forward under one jit.

    x_nchw: (B, 3, H, W) float32 (PyTorch NCHW convention)
    w_oc_ic: (255, 3) conv weight (PyTorch (Cout, Cin, 1, 1) squeezed)
    bias:   (255,) conv bias
    returns (B, 3, H, W, 85) float32
    """
    B, C, H, W = x_nchw.shape
    assert C == C_IN
    HW = H * W

    # Pure metadata: NCHW with H*W flattened -> (B, Cin, HW).  No transpose pass.
    x_cin_hw = x_nchw.reshape(B, C_IN, HW)

    # Per-anchor repack so the kernel writes anchor-major output directly:
    # w_anchor[a, cin, c] = W[a*85 + c, cin];  b_anchor[a, 0, c] = bias[a*85 + c].
    # Tiny (255x3); fused inside the jit, no separate dispatch.
    w_anchor = w_oc_ic.reshape(NUM_ANCHORS, NO, C_IN).transpose(0, 2, 1)   # (A, Cin, NO)
    b_anchor = bias.reshape(NUM_ANCHORS, 1, NO)                            # (A, 1, NO)

    y = conv1x1_yolo_pallas(x_cin_hw, w_anchor, b_anchor)   # (B, A, HW, NO), final layout

    # Pure metadata split of the spatial dim -> (B, 3, H, W, 85).
    out = y.reshape(B, NUM_ANCHORS, H, W, NO)

    # stride = image_size // H is computed in PyTorch but unused in training mode; the
    # eval-mode decode branch never runs (YOLO is freshly constructed with training=True).
    del image_size
    return out


def _reference_forward(x_nchw, w_oc_ic, bias):
    # Pure-JAX reference for correctness checking.
    B, C, H, W = x_nchw.shape
    conv = jnp.einsum("bchw,oc->bohw", x_nchw, w_oc_ic) + bias[None, :, None, None]
    ref = conv.reshape(B, NUM_ANCHORS, NO, H, W).transpose(0, 1, 3, 4, 2)
    return ref


if __name__ == "__main__":
    key = jax.random.PRNGKey(0)
    k_x, k_w, k_b = jax.random.split(key, 3)

    B, H, W = 2, 20, 20  # image_size=20 -> stride would be 1 (unused in training mode)
    x = jax.random.normal(k_x, (B, C_IN, H, W), dtype=jnp.float32)

    # Deterministic parameter init (synthetic; shapes match Conv2d(3, 255, 1)).
    bound = 1.0 / (C_IN ** 0.5)
    w = jax.random.uniform(k_w, (C_OUT, C_IN), jnp.float32, -bound, bound)
    b = jax.random.uniform(k_b, (C_OUT,), jnp.float32, -bound, bound)

    out = jax.block_until_ready(model_forward(x, w, b, image_size=20))

    ref = _reference_forward(x, w, b)
    assert out.shape == (B, NUM_ANCHORS, H, W, NO), out.shape
    assert jnp.allclose(out, ref, atol=1e-4, rtol=1e-4), "mismatch vs reference"

    print("KERNEL_OK")
</pallas_src>

<mosaic_0001>
module attributes {stable_mosaic.version = 11 : i64} {
  func.func @_conv1x1_yolo_kernel(%arg0: i32, %arg1: memref<2x3x400xf32, #tpu.memory_space<vmem>>, %arg2: memref<3x3x85xf32, #tpu.memory_space<vmem>>, %arg3: memref<3x1x85xf32, #tpu.memory_space<vmem>>, %arg4: memref<2x3x400x85xf32, #tpu.memory_space<vmem>>) attributes {dimension_semantics = [#tpu.dimension_semantics<arbitrary>], iteration_bounds = array<i64: 1>, scalar_prefetch = 0 : i64, scratch_operands = 0 : i64, tpu.core_type = #tpu.core_type<tc>, window_params = [{pipeline_mode = #tpu.pipeline_mode<synchronous>, transform_indices = @transform_0, window_bounds = array<i64: 2, 3, 400>}, {pipeline_mode = #tpu.pipeline_mode<synchronous>, transform_indices = @transform_1, window_bounds = array<i64: 3, 3, 85>}, {pipeline_mode = #tpu.pipeline_mode<synchronous>, transform_indices = @transform_2, window_bounds = array<i64: 3, 1, 85>}, {pipeline_mode = #tpu.pipeline_mode<synchronous>, transform_indices = @transform_3, window_bounds = array<i64: 2, 3, 400, 85>}]} {
    %c0 = arith.constant 0 : index
    %c0_0 = arith.constant 0 : index
    %c0_1 = arith.constant 0 : index
    %0 = vector.load %arg1[%c0, %c0_0, %c0_1] : memref<2x3x400xf32, #tpu.memory_space<vmem>>, vector<1x3x400xf32>
    %1 = vector.shape_cast %0 : vector<1x3x400xf32> to vector<3x400xf32>
    %c0_2 = arith.constant 0 : index
    %c0_3 = arith.constant 0 : index
    %c0_4 = arith.constant 0 : index
    %2 = vector.load %arg2[%c0_2, %c0_3, %c0_4] : memref<3x3x85xf32, #tpu.memory_space<vmem>>, vector<1x3x85xf32>
    %3 = vector.shape_cast %2 : vector<1x3x85xf32> to vector<3x85xf32>
    %cst = arith.constant dense<0.000000e+00> : vector<400x85xf32>
    %4 = tpu.matmul %1, %3, %cst {dimension_numbers = #tpu.dot_dimension_numbers<[0], [0], [1], [1], [0, 1, 1, 1], [], []>} : vector<3x400xf32>, vector<3x85xf32>, vector<400x85xf32> -> vector<400x85xf32>
    %c0_5 = arith.constant 0 : index
    %c0_6 = arith.constant 0 : index
    %c0_7 = arith.constant 0 : index
    %5 = vector.load %arg3[%c0_5, %c0_6, %c0_7] : memref<3x1x85xf32, #tpu.memory_space<vmem>>, vector<1x1x85xf32>
    %6 = vector.shape_cast %5 : vector<1x1x85xf32> to vector<1x85xf32>
    %7 = vector.broadcast %6 : vector<1x85xf32> to vector<400x85xf32>
    %8 = arith.addf %4, %7 : vector<400x85xf32>
    %c0_8 = arith.constant 0 : index
    %c0_9 = arith.constant 0 : index
    %c0_10 = arith.constant 0 : index
    %c0_11 = arith.constant 0 : index
    %9 = vector.load %arg4[%c0_8, %c0_9, %c0_10, %c0_11] : memref<2x3x400x85xf32, #tpu.memory_space<vmem>>, vector<1x1x400x85xf32>
    %10 = vector.shape_cast %9 : vector<1x1x400x85xf32> to vector<400x85xf32>
    %11 = vector.shape_cast %8 : vector<400x85xf32> to vector<1x1x400x85xf32>
    tpu.vector_store %arg4[%c0_8, %c0_9, %c0_10, %c0_11], %11 {strides = array<i32>} : memref<2x3x400x85xf32, #tpu.memory_space<vmem>>, vector<1x1x400x85xf32>,
    %c1 = arith.constant 1 : index
    %c0_12 = arith.constant 0 : index
    %c0_13 = arith.constant 0 : index
    %12 = vector.load %arg2[%c1, %c0_12, %c0_13] : memref<3x3x85xf32, #tpu.memory_space<vmem>>, vector<1x3x85xf32>
    %13 = vector.shape_cast %12 : vector<1x3x85xf32> to vector<3x85xf32>
    %cst_14 = arith.constant dense<0.000000e+00> : vector<400x85xf32>
    %14 = tpu.matmul %1, %13, %cst_14 {dimension_numbers = #tpu.dot_dimension_numbers<[0], [0], [1], [1], [0, 1, 1, 1], [], []>} : vector<3x400xf32>, vector<3x85xf32>, vector<400x85xf32> -> vector<400x85xf32>
    %c1_15 = arith.constant 1 : index
    %c0_16 = arith.constant 0 : index
    %c0_17 = arith.constant 0 : index
    %15 = vector.load %arg3[%c1_15, %c0_16, %c0_17] : memref<3x1x85xf32, #tpu.memory_space<vmem>>, vector<1x1x85xf32>
    %16 = vector.shape_cast %15 : vector<1x1x85xf32> to vector<1x85xf32>
    %17 = vector.broadcast %16 : vector<1x85xf32> to vector<400x85xf32>
    %18 = arith.addf %14, %17 : vector<400x85xf32>
    %c0_18 = arith.constant 0 : index
    %c1_19 = arith.constant 1 : index
    %c0_20 = arith.constant 0 : index
    %c0_21 = arith.constant 0 : index
    %19 = vector.load %arg4[%c0_18, %c1_19, %c0_20, %c0_21] : memref<2x3x400x85xf32, #tpu.memory_space<vmem>>, vector<1x1x400x85xf32>
    %20 = vector.shape_cast %19 : vector<1x1x400x85xf32> to vector<400x85xf32>
    %21 = vector.shape_cast %18 : vector<400x85xf32> to vector<1x1x400x85xf32>
    tpu.vector_store %arg4[%c0_18, %c1_19, %c0_20, %c0_21], %21 {strides = array<i32>} : memref<2x3x400x85xf32, #tpu.memory_space<vmem>>, vector<1x1x400x85xf32>,
    %c2 = arith.constant 2 : index
    %c0_22 = arith.constant 0 : index
    %c0_23 = arith.constant 0 : index
    %22 = vector.load %arg2[%c2, %c0_22, %c0_23] : memref<3x3x85xf32, #tpu.memory_space<vmem>>, vector<1x3x85xf32>
    %23 = vector.shape_cast %22 : vector<1x3x85xf32> to vector<3x85xf32>
    %cst_24 = arith.constant dense<0.000000e+00> : vector<400x85xf32>
    %24 = tpu.matmul %1, %23, %cst_24 {dimension_numbers = #tpu.dot_dimension_numbers<[0], [0], [1], [1], [0, 1, 1, 1], [], []>} : vector<3x400xf32>, vector<3x85xf32>, vector<400x85xf32> -> vector<400x85xf32>
    %c2_25 = arith.constant 2 : index
    %c0_26 = arith.constant 0 : index
    %c0_27 = arith.constant 0 : index
    %25 = vector.load %arg3[%c2_25, %c0_26, %c0_27] : memref<3x1x85xf32, #tpu.memory_space<vmem>>, vector<1x1x85xf32>
    %26 = vector.shape_cast %25 : vector<1x1x85xf32> to vector<1x85xf32>
    %27 = vector.broadcast %26 : vector<1x85xf32> to vector<400x85xf32>
    %28 = arith.addf %24, %27 : vector<400x85xf32>
    %c0_28 = arith.constant 0 : index
    %c2_29 = arith.constant 2 : index
    %c0_30 = arith.constant 0 : index
    %c0_31 = arith.constant 0 : index
    %29 = vector.load %arg4[%c0_28, %c2_29, %c0_30, %c0_31] : memref<2x3x400x85xf32, #tpu.memory_space<vmem>>, vector<1x1x400x85xf32>
    %30 = vector.shape_cast %29 : vector<1x1x400x85xf32> to vector<400x85xf32>
    %31 = vector.shape_cast %28 : vector<400x85xf32> to vector<1x1x400x85xf32>
    tpu.vector_store %arg4[%c0_28, %c2_29, %c0_30, %c0_31], %31 {strides = array<i32>} : memref<2x3x400x85xf32, #tpu.memory_space<vmem>>, vector<1x1x400x85xf32>,
    %c1_32 = arith.constant 1 : index
    %c0_33 = arith.constant 0 : index
    %c0_34 = arith.constant 0 : index
    %32 = vector.load %arg1[%c1_32, %c0_33, %c0_34] : memref<2x3x400xf32, #tpu.memory_space<vmem>>, vector<1x3x400xf32>
    %33 = vector.shape_cast %32 : vector<1x3x400xf32> to vector<3x400xf32>
    %c0_35 = arith.constant 0 : index
    %c0_36 = arith.constant 0 : index
    %c0_37 = arith.constant 0 : index
    %34 = vector.load %arg2[%c0_35, %c0_36, %c0_37] : memref<3x3x85xf32, #tpu.memory_space<vmem>>, vector<1x3x85xf32>
    %35 = vector.shape_cast %34 : vector<1x3x85xf32> to vector<3x85xf32>
    %cst_38 = arith.constant dense<0.000000e+00> : vector<400x85xf32>
    %36 = tpu.matmul %33, %35, %cst_38 {dimension_numbers = #tpu.dot_dimension_numbers<[0], [0], [1], [1], [0, 1, 1, 1], [], []>} : vector<3x400xf32>, vector<3x85xf32>, vector<400x85xf32> -> vector<400x85xf32>
    %c0_39 = arith.constant 0 : index
    %c0_40 = arith.constant 0 : index
    %c0_41 = arith.constant 0 : index
    %37 = vector.load %arg3[%c0_39, %c0_40, %c0_41] : memref<3x1x85xf32, #tpu.memory_space<vmem>>, vector<1x1x85xf32>
    %38 = vector.shape_cast %37 : vector<1x1x85xf32> to vector<1x85xf32>
    %39 = vector.broadcast %38 : vector<1x85xf32> to vector<400x85xf32>
    %40 = arith.addf %36, %39 : vector<400x85xf32>
    %c1_42 = arith.constant 1 : index
    %c0_43 = arith.constant 0 : index
    %c0_44 = arith.constant 0 : index
    %c0_45 = arith.constant 0 : index
    %41 = vector.load %arg4[%c1_42, %c0_43, %c0_44, %c0_45] : memref<2x3x400x85xf32, #tpu.memory_space<vmem>>, vector<1x1x400x85xf32>
    %42 = vector.shape_cast %41 : vector<1x1x400x85xf32> to vector<400x85xf32>
    %43 = vector.shape_cast %40 : vector<400x85xf32> to vector<1x1x400x85xf32>
    tpu.vector_store %arg4[%c1_42, %c0_43, %c0_44, %c0_45], %43 {strides = array<i32>} : memref<2x3x400x85xf32, #tpu.memory_space<vmem>>, vector<1x1x400x85xf32>,
    %c1_46 = arith.constant 1 : index
    %c0_47 = arith.constant 0 : index
    %c0_48 = arith.constant 0 : index
    %44 = vector.load %arg2[%c1_46, %c0_47, %c0_48] : memref<3x3x85xf32, #tpu.memory_space<vmem>>, vector<1x3x85xf32>
    %45 = vector.shape_cast %44 : vector<1x3x85xf32> to vector<3x85xf32>
    %cst_49 = arith.constant dense<0.000000e+00> : vector<400x85xf32>
    %46 = tpu.matmul %33, %45, %cst_49 {dimension_numbers = #tpu.dot_dimension_numbers<[0], [0], [1], [1], [0, 1, 1, 1], [], []>} : vector<3x400xf32>, vector<3x85xf32>, vector<400x85xf32> -> vector<400x85xf32>
    %c1_50 = arith.constant 1 : index
    %c0_51 = arith.constant 0 : index
    %c0_52 = arith.constant 0 : index
    %47 = vector.load %arg3[%c1_50, %c0_51, %c0_52] : memref<3x1x85xf32, #tpu.memory_space<vmem>>, vector<1x1x85xf32>
    %48 = vector.shape_cast %47 : vector<1x1x85xf32> to vector<1x85xf32>
    %49 = vector.broadcast %48 : vector<1x85xf32> to vector<400x85xf32>
    %50 = arith.addf %46, %49 : vector<400x85xf32>
    %c1_53 = arith.constant 1 : index
    %c1_54 = arith.constant 1 : index
    %c0_55 = arith.constant 0 : index
    %c0_56 = arith.constant 0 : index
    %51 = vector.load %arg4[%c1_53, %c1_54, %c0_55, %c0_56] : memref<2x3x400x85xf32, #tpu.memory_space<vmem>>, vector<1x1x400x85xf32>
    %52 = vector.shape_cast %51 : vector<1x1x400x85xf32> to vector<400x85xf32>
    %53 = vector.shape_cast %50 : vector<400x85xf32> to vector<1x1x400x85xf32>
    tpu.vector_store %arg4[%c1_53, %c1_54, %c0_55, %c0_56], %53 {strides = array<i32>} : memref<2x3x400x85xf32, #tpu.memory_space<vmem>>, vector<1x1x400x85xf32>,
    %c2_57 = arith.constant 2 : index
    %c0_58 = arith.constant 0 : index
    %c0_59 = arith.constant 0 : index
    %54 = vector.load %arg2[%c2_57, %c0_58, %c0_59] : memref<3x3x85xf32, #tpu.memory_space<vmem>>, vector<1x3x85xf32>
    %55 = vector.shape_cast %54 : vector<1x3x85xf32> to vector<3x85xf32>
    %cst_60 = arith.constant dense<0.000000e+00> : vector<400x85xf32>
    %56 = tpu.matmul %33, %55, %cst_60 {dimension_numbers = #tpu.dot_dimension_numbers<[0], [0], [1], [1], [0, 1, 1, 1], [], []>} : vector<3x400xf32>, vector<3x85xf32>, vector<400x85xf32> -> vector<400x85xf32>
    %c2_61 = arith.constant 2 : index
    %c0_62 = arith.constant 0 : index
    %c0_63 = arith.constant 0 : index
    %57 = vector.load %arg3[%c2_61, %c0_62, %c0_63] : memref<3x1x85xf32, #tpu.memory_space<vmem>>, vector<1x1x85xf32>
    %58 = vector.shape_cast %57 : vector<1x1x85xf32> to vector<1x85xf32>
    %59 = vector.broadcast %58 : vector<1x85xf32> to vector<400x85xf32>
    %60 = arith.addf %56, %59 : vector<400x85xf32>
    %c1_64 = arith.constant 1 : index
    %c2_65 = arith.constant 2 : index
    %c0_66 = arith.constant 0 : index
    %c0_67 = arith.constant 0 : index
    %61 = vector.load %arg4[%c1_64, %c2_65, %c0_66, %c0_67] : memref<2x3x400x85xf32, #tpu.memory_space<vmem>>, vector<1x1x400x85xf32>
    %62 = vector.shape_cast %61 : vector<1x1x400x85xf32> to vector<400x85xf32>
    %63 = vector.shape_cast %60 : vector<400x85xf32> to vector<1x1x400x85xf32>
    tpu.vector_store %arg4[%c1_64, %c2_65, %c0_66, %c0_67], %63 {strides = array<i32>} : memref<2x3x400x85xf32, #tpu.memory_space<vmem>>, vector<1x1x400x85xf32>,
    return
  }
  func.func @transform_0(%arg0: i32) -> (i32, i32, i32) {
    %c0_i32 = arith.constant 0 : i32
    %c0_i32_0 = arith.constant 0 : i32
    %c0_i32_1 = arith.constant 0 : i32
    %c0_i32_2 = arith.constant 0 : i32
    return %c0_i32, %c0_i32_0, %c0_i32_1 : i32, i32, i32
  }
  func.func @transform_1(%arg0: i32) -> (i32, i32, i32) {
    %c0_i32 = arith.constant 0 : i32
    %c0_i32_0 = arith.constant 0 : i32
    %c0_i32_1 = arith.constant 0 : i32
    %c0_i32_2 = arith.constant 0 : i32
    return %c0_i32, %c0_i32_0, %c0_i32_1 : i32, i32, i32
  }
  func.func @transform_2(%arg0: i32) -> (i32, i32, i32) {
    %c0_i32 = arith.constant 0 : i32
    %c0_i32_0 = arith.constant 0 : i32
    %c0_i32_1 = arith.constant 0 : i32
    %c0_i32_2 = arith.constant 0 : i32
    return %c0_i32, %c0_i32_0, %c0_i32_1 : i32, i32, i32
  }
  func.func @transform_3(%arg0: i32) -> (i32, i32, i32, i32) {
    %c0_i32 = arith.constant 0 : i32
    %c0_i32_0 = arith.constant 0 : i32
    %c0_i32_1 = arith.constant 0 : i32
    %c0_i32_2 = arith.constant 0 : i32
    %c0_i32_3 = arith.constant 0 : i32
    return %c0_i32, %c0_i32_0, %c0_i32_1, %c0_i32_2 : i32, i32, i32, i32
  }
}

</mosaic_0001>

<bundles_post_ra>
// kernel: model_forward.1
= control target key start
LH: loop header
LB: loop body
LE: loop exit
PB: predicated region body
PF: predicated region fallthrough
CT: control target
= control target key end

     0   :  { %vm309_vm0 = vcmask 1042432   ;;  %vm158_vm1 = vcmask 23552   ;;  %vm628_vm2 = vcmask 695296   ;;  %s6611_s0 = inlined_call_operand.vmem [shape: f32[2,3,400], index: 0, kind: input, shape index: {}]   ;;  %s6612_s1 = inlined_call_operand.vmem [shape: f32[3,3,85], index: 1, kind: input, shape index: {}]   ;;  %s6613_s2 = inlined_call_operand.vmem [shape: f32[3,1,85], index: 2, kind: input, shape index: {}]   ;;  %s6614_s3 = inlined_call_operand.vmem [shape: f32[2,3,400,85], index: 3, kind: output, shape index: {}]  }
   0x1   :  { %v14_v0 = vld [vmem:[%s6611_s0] sm:$0x77]  ;;  %v15_v1 = vld [vmem:[%s6611_s0 + $0x8] sm:$0x77]  ;;  %v3119_v8 = vld [vmem:[%s6611_s0 + $0x10] sm:$0x77] }
   0x2   :  { %v16_v2 = vld [vmem:[%s6612_s1] sm:$0x7]  ;;  %30 = vxpose.xlu0.b32.start.end [1/1] (short) %v14_v0, 128  ;;  %94 = vxpose.xlu1.b32.start.end [1/1] (short) %v15_v1, 128  ;;  %v2911_v3 = vld [vmem:[%s6612_s1 + $0x4] sm:$0x7]  ;;  %v26_v4 = vcombine.high %v14_v0, %v14_v0  ;;  %v27_v5 = vcombine.high %v15_v1, %v15_v1  ;;  %v3015_v6 = vld [vmem:[%s6612_s1 + $0x8] sm:$0x7]  ;;  %v1450_v9 = vcombine.high %v3119_v8, %v3119_v8 }
   0x3   :  { %3737 = vmatprep.subr.msk.mxu0 %vm309_vm0, %v16_v2  ;;  %3814 = vmatprep.subr.msk.mxu1 %vm309_vm0, %v2911_v3  ;;  %v1440_v7 = vld [vmem:[%s6612_s1] sm:$0x7]  ;;  %v4260_v12 = vld [vmem:[%s6611_s0 + $0x18] sm:$0x77]  ;;  %v4336_v29 = vld [vmem:[%s6612_s1 + $0x4] sm:$0x7] }
   0x4   :  { %3738 = vmatpush3.msk.msra.mxu0 %vm309_vm0, %v16_v2  ;;  %3815 = vmatpush3.msk.msra.mxu1 %vm309_vm0, %v2911_v3  ;;  %v4341_v30 = vld [vmem:[%s6612_s1 + $0x8] sm:$0x7]  ;;  %v1451_v41 = vcombine.high %v4260_v12, %v4260_v12 }
   0x5   :  { %3891 = vmatprep.subr.msk.mxu0 %vm309_vm0, %v3015_v6  ;;  %3968 = vmatprep.subr.msk.mxu1 %vm309_vm0, %v1440_v7 }
  0x3f   :  { %62 = vxpose.xlu0.b32.start.end [1/1] (short) %v26_v4, 128  ;;  %126 = vxpose.xlu1.b32.start.end [1/1] (short) (narrow) %v27_v5, 16 }
  0x44   :  { %1486 = vxpose.xlu1.b32.start.end [1/1] (short) %v1450_v9, 128 }
  0x7c   :  { %1454 = vxpose.xlu0.b32.start.end [1/1] (short) %v3119_v8, 128 }
  0x7e   :  { %v4253_v10 = vpop.trf.xlu0  ;;  %v4255_v11 = vpop.trf.xlu1 }
  0x7f   :  { %6630 = vst [vmem:[#allocation2_spill] sm:$0xff] %v4255_v11  ;;  %3739 = vmatprep.mubr.msk.f32.mxu0 %vm158_vm1, %v4253_v10  ;;  %3816 = vmatprep.mubr.msk.f32.mxu1 %vm158_vm1, %v4253_v10 }
  0x81   :  { %1518 = vxpose.xlu1.b32.start.end [1/1] (short) %v4260_v12, 128 }
  0x82   :  { %v4267_v13 = vpop.trf.xlu0  ;;  %v4269_v14 = vpop.trf.xlu1 }
  0x83   :  { %6631 = vst [vmem:[#allocation3_spill] sm:$0xff] %v4269_v14  ;;  %3740 = vmatmul.mubr.msk.f32.vlgmr.msra.gmra.mxu0 %vm158_vm1, %v4267_v13  ;;  %3817 = vmatmul.mubr.msk.f32.vlgmr.msra.gmra.mxu1 %vm158_vm1, %v4267_v13 }
  0x84   :  { %3892 = vmatpush3.msk.msra.mxu0 %vm309_vm0, %v3015_v6  ;;  %3969 = vmatpush3.msk.msra.mxu1 %vm309_vm0, %v1440_v7 }
  0x85   :  { %4045 = vmatprep.subr.msk.mxu0 %vm309_vm0, %v4336_v29  ;;  %4122 = vmatprep.subr.msk.mxu1 %vm309_vm0, %v4341_v30 }
  0x86   :  { %v4277_v15 = vpop.trf.xlu0  ;;  %v4279_v16 = vpop.trf.xlu1 }
  0x87   :  { %6632 = vst [vmem:[#allocation4_spill] sm:$0xff] %v4279_v16  ;;  %3742 = vmatprep.mubr.msk.f32.mxu0 %vm158_vm1, %v4277_v15  ;;  %3819 = vmatprep.mubr.msk.f32.mxu1 %vm158_vm1, %v4277_v15 }
  0x8a   :  { %v4285_v17 = vpop.trf.xlu0  ;;  %v4287_v18 = vpop.trf.xlu1 }
  0x8b   :  { %6633 = vst [vmem:[#allocation5_spill] sm:$0xff] %v4287_v18  ;;  %3743 = vmatmul.mubr.msk.f32.gmra.mxu0 %vm158_vm1, %v4285_v17  ;;  %3820 = vmatmul.mubr.msk.f32.gmra.mxu1 %vm158_vm1, %v4285_v17 }
  0x8e   :  { %v4293_v19 = vpop.trf.xlu0  ;;  %v4295_v20 = vpop.trf.xlu1 }
  0x8f   :  { %3745 = vmatprep.mubr.msk.f32.mxu0 %vm158_vm1, %v4293_v19  ;;  %3822 = vmatprep.mubr.msk.f32.mxu1 %vm158_vm1, %v4293_v19 }
  0x92   :  { %v4301_v21 = vpop.trf.xlu0  ;;  %v4303_v22 = vpop.trf.xlu1 }
  0x93   :  { %6634 = vst [vmem:[#allocation6_spill] sm:$0xff] %v4303_v22  ;;  %3746 = vmatmul.mubr.msk.f32.gmra.mxu0 %vm158_vm1, %v4301_v21  ;;  %3823 = vmatmul.mubr.msk.f32.gmra.mxu1 %vm158_vm1, %v4301_v21 }
  0x96   :  { %v4309_v23 = vpop.trf.xlu0  ;;  %v4311_v24 = vpop.trf.xlu1 }
  0x97   :  { %6635 = vst [vmem:[#allocation7_spill] sm:$0xff] %v4311_v24  ;;  %3748 = vmatprep.mubr.msk.f32.mxu0 %vm158_vm1, %v4309_v23  ;;  %3825 = vmatprep.mubr.msk.f32.mxu1 %vm158_vm1, %v4309_v23 }
  0x9a   :  { %v4317_v25 = vpop.trf.xlu0  ;;  %v4319_v26 = vpop.trf.xlu1 }
  0x9b   :  { %6636 = vst [vmem:[#allocation8_spill] sm:$0xff] %v4319_v26  ;;  %3749 = vmatmul.mubr.msk.f32.gmra.mxu0 %vm158_vm1, %v4317_v25  ;;  %3826 = vmatmul.mubr.msk.f32.gmra.mxu1 %vm158_vm1, %v4317_v25 }
  0x9e   :  { %v4325_v27 = vpop.trf.xlu0  ;;  %v4327_v28 = vpop.trf.xlu1 }
  0x9f   :  { %6637 = vst [vmem:[#allocation9_spill] sm:$0xff] %v4327_v28  ;;  %3751 = vmatprep.mubr.msk.f32.mxu0 %vm158_vm1, %v4325_v27  ;;  %3828 = vmatprep.mubr.msk.f32.mxu1 %vm158_vm1, %v4325_v27 }
  0xa2   :  { %v4347_v31 = vpop.trf.xlu0  ;;  %v4349_v32 = vpop.trf.xlu1 }
  0xa3   :  { %6638 = vst [vmem:[#allocation10_spill] sm:$0xff] %v4349_v32  ;;  %3752 = vmatmul.mubr.msk.f32.gmra.mxu0 %vm158_vm1, %v4347_v31  ;;  %3829 = vmatmul.mubr.msk.f32.gmra.mxu1 %vm158_vm1, %v4347_v31 }
  0xa6   :  { %v4355_v33 = vpop.trf.xlu0  ;;  %v4357_v34 = vpop.trf.xlu1 }
  0xa7   :  { %3754 = vmatprep.mubr.msk.f32.mxu0 %vm158_vm1, %v4355_v33  ;;  %3831 = vmatprep.mubr.msk.f32.mxu1 %vm158_vm1, %v4355_v33 }
  0xaa   :  { %v4363_v35 = vpop.trf.xlu0  ;;  %v4365_v36 = vpop.trf.xlu1 }
  0xab   :  { %6639 = vst [vmem:[#allocation11_spill] sm:$0xff] %v4365_v36  ;;  %3755 = vmatmul.mubr.msk.f32.gmra.mxu0 %vm158_vm1, %v4363_v35  ;;  %3832 = vmatmul.mubr.msk.f32.gmra.mxu1 %vm158_vm1, %v4363_v35 }
  0xae   :  { %v4371_v37 = vpop.trf.xlu0  ;;  %v4373_v38 = vpop.trf.xlu1 }
  0xaf   :  { %6640 = vst [vmem:[#allocation12_spill] sm:$0xff] %v4373_v38  ;;  %3757 = vmatprep.mubr.msk.f32.mxu0 %vm158_vm1, %v4371_v37  ;;  %3834 = vmatprep.mubr.msk.f32.mxu1 %vm158_vm1, %v4371_v37 }
  0xb2   :  { %v4379_v39 = vpop.trf.xlu0  ;;  %v4381_v40 = vpop.trf.xlu1 }
  0xb3   :  { %6641 = vst [vmem:[#allocation13_spill] sm:$0xff] %v4381_v40  ;;  %3758 = vmatmul.mubr.msk.f32.gmra.mxu0 %vm158_vm1, %v4379_v39  ;;  %3835 = vmatmul.mubr.msk.f32.gmra.mxu1 %vm158_vm1, %v4379_v39 }
  0xb6   :  { %v4389_v42 = vpop.trf.xlu0  ;;  %v4391_v43 = vpop.trf.xlu1 }
  0xb7   :  { %6642 = vst [vmem:[#allocation14_spill] sm:$0xff] %v4391_v43  ;;  %3760 = vmatprep.mubr.msk.f32.mxu0 %vm158_vm1, %v4389_v42  ;;  %3837 = vmatprep.mubr.msk.f32.mxu1 %vm158_vm1, %v4389_v42 }
  0xb9   :  { %1550 = vxpose.xlu0.b32.start.end [1/1] (short) (narrow) %v1451_v41, 16 }
  0xba   :  { %v4397_v44 = vpop.trf.xlu0  ;;  %v4399_v45 = vpop.trf.xlu1 }
  0xbb   :  { %6643 = vst [vmem:[#allocation15_spill] sm:$0xff] %v4399_v45  ;;  %3761 = vmatmul.mubr.msk.f32.gmra.mxu0 %vm158_vm1, %v4397_v44  ;;  %3838 = vmatmul.mubr.msk.f32.gmra.mxu1 %vm158_vm1, %v4397_v44 }
  0xbe   :  { %v4405_v46 = vpop.trf.xlu0  ;;  %v4407_v47 = vpop.trf.xlu1 }
  0xbf   :  { %3763 = vmatprep.mubr.msk.f32.mxu0 %vm158_vm1, %v4405_v46  ;;  %3840 = vmatprep.mubr.msk.f32.mxu1 %vm158_vm1, %v4405_v46 }
  0xc2   :  { %v4413_v48 = vpop.trf.xlu0  ;;  %v4415_v49 = vpop.trf.xlu1 }
  0xc3   :  { %3764 = vmatmul.mubr.msk.f32.gmra.mxu0 %vm158_vm1, %v4413_v48  ;;  %3841 = vmatmul.mubr.msk.f32.gmra.mxu1 %vm158_vm1, %v4413_v48 }
  0xc6   :  { %v4421_v50 = vpop.trf.xlu0  ;;  %v4423_v51 = vpop.trf.xlu1 }
  0xc7   :  { %3766 = vmatprep.mubr.msk.f32.mxu0 %vm158_vm1, %v4421_v50  ;;  %3843 = vmatprep.mubr.msk.f32.mxu1 %vm158_vm1, %v4421_v50 }
  0xca   :  { %v4429_v52 = vpop.trf.xlu0  ;;  %v4431_v53 = vpop.trf.xlu1 }
  0xcb   :  { %3767 = vmatmul.mubr.msk.f32.gmra.mxu0 %vm158_vm1, %v4429_v52  ;;  %3844 = vmatmul.mubr.msk.f32.gmra.mxu1 %vm158_vm1, %v4429_v52 }
  0xce   :  { %v4437_v54 = vpop.trf.xlu0  ;;  %v4439_v55 = vpop.trf.xlu1 }
  0xcf   :  { %3769 = vmatprep.mubr.msk.f32.mxu0 %vm158_vm1, %v4437_v54  ;;  %3846 = vmatprep.mubr.msk.f32.mxu1 %vm158_vm1, %v4437_v54 }
  0xd2   :  { %v4445_v56 = vpop.trf.xlu0  ;;  %v4451_v57 = vpop.trf.xlu1 }
  0xd3   :  { %3770 = vmatmul.mubr.msk.f32.gmra.mxu0 %vm158_vm1, %v4445_v56  ;;  %3847 = vmatmul.mubr.msk.f32.gmra.mxu1 %vm158_vm1, %v4445_v56 }
  0xd6   :  { %v4453_v58 = vpop.trf.xlu0  ;;  %v4461_v60 = vpop.trf.xlu1 }
  0xd7   :  { %3772 = vmatprep.mubr.msk.f32.mxu0 %vm158_vm1, %v4453_v58  ;;  %3849 = vmatprep.mubr.msk.f32.mxu1 %vm158_vm1, %v4453_v58 }
  0xda   :  { %v4459_v59 = vpop.trf.xlu0  ;;  %v4473_v62 = vpop.trf.xlu1 }
  0xdb   :  { %3773 = vmatmul.mubr.msk.f32.gmra.mxu0 %vm158_vm1, %v4459_v59  ;;  %3850 = vmatmul.mubr.msk.f32.gmra.mxu1 %vm158_vm1, %v4459_v59 }
  0xde   :  { %v4467_v61 = vpop.trf.xlu0  ;;  %v4483_v1 = vpop.trf.xlu1 }
  0xdf   :  { %3775 = vmatprep.mubr.msk.f32.mxu0 %vm158_vm1, %v4467_v61  ;;  %3852 = vmatprep.mubr.msk.f32.mxu1 %vm158_vm1, %v4467_v61 }
  0xe2   :  { %v4475_v63 = vpop.trf.xlu0  ;;  %v4495_v3 = vpop.trf.xlu1 }
  0xe3   :  { %3776 = vmatmul.mubr.msk.f32.gmra.mxu0 %vm158_vm1, %v4475_v63  ;;  %3853 = vmatmul.mubr.msk.f32.gmra.mxu1 %vm158_vm1, %v4475_v63 }
  0xe6   :  { %v4481_v0 = vpop.trf.xlu0  ;;  %v4505_v6 = vpop.trf.xlu1 }
  0xe7   :  { %3778 = vmatprep.mubr.msk.f32.mxu0 %vm158_vm1, %v4481_v0  ;;  %3855 = vmatprep.mubr.msk.f32.mxu1 %vm158_vm1, %v4481_v0 }
  0xea   :  { %v4489_v2 = vpop.trf.xlu0  ;;  %v4517_v8 = vpop.trf.xlu1 }
  0xeb   :  { %3779 = vmatmul.mubr.msk.f32.gmra.mxu0 %vm158_vm1, %v4489_v2  ;;  %3856 = vmatmul.mubr.msk.f32.gmra.mxu1 %vm158_vm1, %v4489_v2 }
  0xee   :  { %v4497_v4 = vpop.trf.xlu0  ;;  %v4531_v41 = vpop.trf.xlu1 }
  0xef   :  { %3781 = vmatprep.mubr.msk.f32.mxu0 %vm158_vm1, %v4497_v4  ;;  %3858 = vmatprep.mubr.msk.f32.mxu1 %vm158_vm1, %v4497_v4 }
  0xf2   :  { %v4503_v5 = vpop.trf.xlu0 }
  0xf3   :  { %3782 = vmatmul.mubr.msk.f32.gmra.mxu0 %vm158_vm1, %v4503_v5  ;;  %3859 = vmatmul.mubr.msk.f32.gmra.mxu1 %vm158_vm1, %v4503_v5 }
  0xf6   :  { %v4511_v7 = vpop.trf.xlu0 }
  0xf7   :  { %3784 = vmatprep.mubr.msk.f32.mxu0 %vm158_vm1, %v4511_v7  ;;  %3861 = vmatprep.mubr.msk.f32.mxu1 %vm158_vm1, %v4511_v7 }
  0xfa   :  { %v4519_v9 = vpop.trf.xlu0 }
  0xfb   :  { %6644 = vst [vmem:[#allocation16_spill] sm:$0xff] %v4519_v9  ;;  %3785 = vmatmul.mubr.msk.f32.gmra.mxu0 %vm158_vm1, %v4519_v9  ;;  %3862 = vmatmul.mubr.msk.f32.gmra.mxu1 %vm158_vm1, %v4519_v9 }
  0xfc   :  { %3787 = vmatprep.mubr.msk.f32.mxu0 %vm158_vm1, %v4255_v11  ;;  %3864 = vmatprep.mubr.msk.f32.mxu1 %vm158_vm1, %v4255_v11 }
  0xfe   :  { %v4529_v12 = vpop.trf.xlu0 }
  0xff   :  { %3788 = vmatmul.mubr.msk.f32.gmra.mxu0 %vm158_vm1, %v4269_v14  ;;  %3865 = vmatmul.mubr.msk.f32.gmra.mxu1 %vm158_vm1, %v4269_v14  ;;  %v4551_v14 = vpop.trf.xlu1 }
 0x100   :  { %3790 = vmatprep.mubr.msk.f32.mxu0 %vm158_vm1, %v4279_v16  ;;  %3867 = vmatprep.mubr.msk.f32.mxu1 %vm158_vm1, %v4279_v16 }
 0x102   :  { %v4541_v9 = vpop.trf.xlu0 }
 0x103   :  { %3791 = vmatmul.mubr.msk.f32.gmra.mxu0 %vm158_vm1, %v4287_v18  ;;  %3868 = vmatmul.mubr.msk.f32.gmra.mxu1 %vm158_vm1, %v4287_v18  ;;  %v4565_v16 = vpop.trf.xlu1 }
 0x104   :  { %3793 = vmatprep.mubr.msk.f32.mxu0 %vm158_vm1, %v4295_v20  ;;  %3870 = vmatprep.mubr.msk.f32.mxu1 %vm158_vm1, %v4295_v20 }
 0x106   :  { %v4553_v11 = vpop.trf.xlu0 }
 0x107   :  { %3794 = vmatmul.mubr.msk.f32.gmra.mxu0 %vm158_vm1, %v4303_v22  ;;  %3871 = vmatmul.mubr.msk.f32.gmra.mxu1 %vm158_vm1, %v4303_v22 }
 0x108   :  { %3796 = vmatprep.mubr.msk.f32.mxu0 %vm158_vm1, %v4311_v24  ;;  %3873 = vmatprep.mubr.msk.f32.mxu1 %vm158_vm1, %v4311_v24 }
 0x10a   :  { %v4563_v18 = vpop.trf.xlu0 }
 0x10b   :  { %3797 = vmatmul.mubr.msk.f32.gmra.mxu0 %vm158_vm1, %v4319_v26  ;;  %3874 = vmatmul.mubr.msk.f32.gmra.mxu1 %vm158_vm1, %v4319_v26  ;;  %v4585_v26 = vpop.trf.xlu1 }
 0x10c   :  { %3799 = vmatprep.mubr.msk.f32.mxu0 %vm158_vm1, %v4327_v28  ;;  %3876 = vmatprep.mubr.msk.f32.mxu1 %vm158_vm1, %v4327_v28 }
 0x10e   :  { %v4575_v22 = vpop.trf.xlu0 }
 0x10f   :  { %3800 = vmatmul.mubr.msk.f32.gmra.mxu0 %vm158_vm1, %v4349_v32  ;;  %3877 = vmatmul.mubr.msk.f32.gmra.mxu1 %vm158_vm1, %v4349_v32  ;;  %v4599_v28 = vpop.trf.xlu1 }
 0x110   :  { %3802 = vmatprep.mubr.msk.f32.mxu0 %vm158_vm1, %v4357_v34  ;;  %3879 = vmatprep.mubr.msk.f32.mxu1 %vm158_vm1, %v4357_v34 }
 0x112   :  { %v4587_v24 = vpop.trf.xlu0 }
 0x113   :  { %3803 = vmatmul.mubr.msk.f32.gmra.mxu0 %vm158_vm1, %v4365_v36  ;;  %3880 = vmatmul.mubr.msk.f32.gmra.mxu1 %vm158_vm1, %v4365_v36 }
 0x114   :  { %3805 = vmatprep.mubr.msk.f32.mxu0 %vm158_vm1, %v4373_v38  ;;  %3882 = vmatprep.mubr.msk.f32.mxu1 %vm158_vm1, %v4373_v38 }
 0x116   :  { %v4597_v32 = vpop.trf.xlu0 }
 0x117   :  { %3806 = vmatmul.mubr.msk.f32.gmra.mxu0 %vm158_vm1, %v4381_v40  ;;  %3883 = vmatmul.mubr.msk.f32.gmra.mxu1 %vm158_vm1, %v4381_v40  ;;  %v4619_v40 = vpop.trf.xlu1 }
 0x118   :  { %3808 = vmatprep.mubr.msk.f32.mxu0 %vm158_vm1, %v4391_v43  ;;  %3885 = vmatprep.mubr.msk.f32.mxu1 %vm158_vm1, %v4391_v43 }
 0x11a   :  { %v4609_v36 = vpop.trf.xlu0 }
 0x11b   :  { %3809 = vmatmul.mubr.msk.f32.gmra.mxu0 %vm158_vm1, %v4399_v45  ;;  %3886 = vmatmul.mubr.msk.f32.gmra.mxu1 %vm158_vm1, %v4399_v45  ;;  %v4633_v43 = vpop.trf.xlu1 }
 0x11c   :  { %3811 = vmatprep.mubr.msk.f32.mxu0 %vm158_vm1, %v4407_v47  ;;  %3888 = vmatprep.mubr.msk.f32.mxu1 %vm158_vm1, %v4407_v47 }
 0x11e   :  { %v4621_v38 = vpop.trf.xlu0 }
 0x11f   :  { %3812 = vmatmul.mubr.msk.f32.gmra.mxu0 %vm158_vm1, %v4415_v49  ;;  %3889 = vmatmul.mubr.msk.f32.gmra.mxu1 %vm158_vm1, %v4415_v49 }
 0x120   :  { %3893 = vmatprep.mubr.msk.f32.mxu0 %vm158_vm1, %v4253_v10  ;;  %3970 = vmatprep.mubr.msk.f32.mxu1 %vm158_vm1, %v4529_v12 }
 0x122   :  { %v4631_v45 = vpop.trf.xlu0 }
 0x123   :  { %3894 = vmatmul.mubr.msk.f32.vlgmr.msra.gmra.mxu0 %vm158_vm1, %v4267_v13  ;;  %3971 = vmatmul.mubr.msk.f32.vlgmr.msra.gmra.mxu1 %vm158_vm1, %v4541_v9  ;;  %v4657_v13 = vpop.trf.xlu1 }
 0x124   :  { %4046 = vmatpush3.msk.msra.mxu0 %vm309_vm0, %v4336_v29  ;;  %4123 = vmatpush3.msk.msra.mxu1 %vm309_vm0, %v4341_v30 }
 0x125   :  { %3896 = vmatprep.mubr.msk.f32.mxu0 %vm158_vm1, %v4277_v15  ;;  %3973 = vmatprep.mubr.msk.f32.mxu1 %vm158_vm1, %v4553_v11 }
 0x126   :  { %v4647_v10 = vpop.trf.xlu0 }
 0x127   :  { %3897 = vmatmul.mubr.msk.f32.gmra.mxu0 %vm158_vm1, %v4285_v17  ;;  %3974 = vmatmul.mubr.msk.f32.gmra.mxu1 %vm158_vm1, %v4563_v18 }
 0x128   :  { %3899 = vmatprep.mubr.msk.f32.mxu0 %vm158_vm1, %v4293_v19  ;;  %3976 = vmatprep.mubr.msk.f32.mxu1 %vm158_vm1, %v4575_v22  ;;  %v4671_v19 = vpop.trf.xlu1 }
 0x12a   :  { %v4659_v15 = vpop.trf.xlu0 }
 0x12b   :  { %3900 = vmatmul.mubr.msk.f32.gmra.mxu0 %vm158_vm1, %v4301_v21  ;;  %3977 = vmatmul.mubr.msk.f32.gmra.mxu1 %vm158_vm1, %v4587_v24 }
 0x12c   :  { %3902 = vmatprep.mubr.msk.f32.mxu0 %vm158_vm1, %v4309_v23  ;;  %3979 = vmatprep.mubr.msk.f32.mxu1 %vm158_vm1, %v4597_v32  ;;  %v4691_v23 = vpop.trf.xlu1 }
 0x12e   :  { %v4669_v17 = vpop.trf.xlu0 }
 0x12f   :  { %3903 = vmatmul.mubr.msk.f32.gmra.mxu0 %vm158_vm1, %v4317_v25  ;;  %3980 = vmatmul.mubr.msk.f32.gmra.mxu1 %vm158_vm1, %v4609_v36 }
 0x130   :  { %3905 = vmatprep.mubr.msk.f32.mxu0 %vm158_vm1, %v4325_v27  ;;  %3982 = vmatprep.mubr.msk.f32.mxu1 %vm158_vm1, %v4621_v38  ;;  %v4703_v27 = vpop.trf.xlu1 }
 0x132   :  { %v4681_v21 = vpop.trf.xlu0 }
 0x133   :  { %3906 = vmatmul.mubr.msk.f32.gmra.mxu0 %vm158_vm1, %v4347_v31  ;;  %3983 = vmatmul.mubr.msk.f32.gmra.mxu1 %vm158_vm1, %v4631_v45  ;;  %v4728_v31 = vld [vmem:[%s6613_s2] ss:$0 sm:$0xff] }
 0x134   :  { %3908 = vmatprep.mubr.msk.f32.mxu0 %vm158_vm1, %v4355_v33  ;;  %3985 = vmatprep.mubr.msk.f32.mxu1 %vm158_vm1, %v4647_v10  ;;  %v4723_v30 = vpop.trf.xlu1  ;;  %v4733_v33 = vld [vmem:[%s6613_s2 + $0x1] ss:$0 sm:$0xff] }
 0x136   :  { %v4693_v25 = vpop.trf.xlu0 }
 0x137   :  { %3909 = vmatmul.mubr.msk.f32.gmra.mxu0 %vm158_vm1, %v4363_v35  ;;  %3986 = vmatmul.mubr.msk.f32.gmra.mxu1 %vm158_vm1, %v4659_v15 }
 0x138   :  { %3911 = vmatprep.mubr.msk.f32.mxu0 %vm158_vm1, %v4371_v37  ;;  %3988 = vmatprep.mubr.msk.f32.mxu1 %vm158_vm1, %v4669_v17 }
 0x13a   :  { %v4713_v29 = vpop.trf.xlu0 }
 0x13b   :  { %3912 = vmatmul.mubr.msk.f32.gmra.mxu0 %vm158_vm1, %v4379_v39  ;;  %3989 = vmatmul.mubr.msk.f32.gmra.mxu1 %vm158_vm1, %v4681_v21 }
 0x13c   :  { %3914 = vmatprep.mubr.msk.f32.mxu0 %vm158_vm1, %v4389_v42  ;;  %3991 = vmatprep.mubr.msk.f32.mxu1 %vm158_vm1, %v4693_v25 }
 0x13f   :  { %3915 = vmatmul.mubr.msk.f32.gmra.mxu0 %vm158_vm1, %v4397_v44  ;;  %3992 = vmatmul.mubr.msk.f32.gmra.mxu1 %vm158_vm1, %v4713_v29 }
 0x140   :  { %3917 = vmatprep.mubr.msk.f32.mxu0 %vm158_vm1, %v4405_v46  ;;  %3994 = vmatprep.mubr.msk.f32.mxu1 %vm158_vm1, %v4423_v51 }
 0x143   :  { %v3741_v35 = vpop.f32.mrf.mxu0  ;;  %v3818_v37 = vpop.f32.mrf.mxu1  ;;  %3918 = vmatmul.mubr.msk.f32.gmra.mxu0 %vm158_vm1, %v4413_v48  ;;  %3995 = vmatmul.mubr.msk.f32.gmra.mxu1 %vm158_vm1, %v4431_v53 }
 0x144   :  { %v385_v39 = vadd.f32 %v3741_v35, %v4728_v31  ;;  %v764_v42 = vadd.f32 %v3818_v37, %v4733_v33  ;;  %3920 = vmatprep.mubr.msk.f32.mxu0 %vm158_vm1, %v4421_v50  ;;  %3997 = vmatprep.mubr.msk.f32.mxu1 %vm158_vm1, %v4439_v55  ;;  %v4755_v50 = vpop.trf.xlu1 }
 0x145   :  { %v379_v44 = vpop.f32.mrf.mxu0  ;;  %v758_v46 = vpop.f32.mrf.mxu1 }
 0x146   :  { %630 = vst.msk [vmem:[%s6614_s3 + $0x8] sm:$0xff] %vm628_vm2, %v385_v39  ;;  %2966 = vst.msk [vmem:[%s6614_s3 + $0x198] sm:$0xff] %vm628_vm2, %v764_v42  ;;  %v380_v48 = vadd.f32 %v4728_v31, %v379_v44  ;;  %v759_v35 = vadd.f32 %v4733_v33, %v758_v46 }
 0x147   :  { %3921 = vmatmul.mubr.msk.f32.gmra.mxu0 %vm158_vm1, %v4429_v52  ;;  %3998 = vmatmul.mubr.msk.f32.gmra.mxu1 %vm158_vm1, %v4451_v57 }
 0x148   :  { %629 = vst.msk [vmem:[%s6614_s3] sm:$0xff] %vm628_vm2, %v380_v48  ;;  %2965 = vst.msk [vmem:[%s6614_s3 + $0x190] sm:$0xff] %vm628_vm2, %v759_v35  ;;  %3923 = vmatprep.mubr.msk.f32.mxu0 %vm158_vm1, %v4437_v54  ;;  %4000 = vmatprep.mubr.msk.f32.mxu1 %vm158_vm1, %v4461_v60  ;;  %v4783_v54 = vpop.trf.xlu1 }
 0x14b   :  { %v3744_v52 = vpop.f32.mrf.mxu0  ;;  %v3821_v37 = vpop.f32.mrf.mxu1  ;;  %3924 = vmatmul.mubr.msk.f32.gmra.mxu0 %vm158_vm1, %v4445_v56  ;;  %4001 = vmatmul.mubr.msk.f32.gmra.mxu1 %vm158_vm1, %v4473_v62 }
 0x14c   :  { %v395_v39 = vadd.f32 %v3744_v52, %v4728_v31  ;;  %v774_v42 = vadd.f32 %v3821_v37, %v4733_v33  ;;  %3926 = vmatprep.mubr.msk.f32.mxu0 %vm158_vm1, %v4453_v58  ;;  %4003 = vmatprep.mubr.msk.f32.mxu1 %vm158_vm1, %v4483_v1 }
 0x14d   :  { %v389_v44 = vpop.f32.mrf.mxu0  ;;  %v768_v46 = vpop.f32.mrf.mxu1 }
 0x14e   :  { %632 = vst.msk [vmem:[%s6614_s3 + $0x18] sm:$0xff] %vm628_vm2, %v395_v39  ;;  %2968 = vst.msk [vmem:[%s6614_s3 + $0x1a8] sm:$0xff] %vm628_vm2, %v774_v42  ;;  %v390_v56 = vadd.f32 %v4728_v31, %v389_v44  ;;  %v769_v58 = vadd.f32 %v4733_v33, %v768_v46 }
 0x14f   :  { %3927 = vmatmul.mubr.msk.f32.gmra.mxu0 %vm158_vm1, %v4459_v59  ;;  %4004 = vmatmul.mubr.msk.f32.gmra.mxu1 %vm158_vm1, %v4495_v3  ;;  %v4811_v59 = vpop.trf.xlu1 }
 0x150   :  { %631 = vst.msk [vmem:[%s6614_s3 + $0x10] sm:$0xff] %vm628_vm2, %v390_v56  ;;  %2967 = vst.msk [vmem:[%s6614_s3 + $0x1a0] sm:$0xff] %vm628_vm2, %v769_v58  ;;  %3929 = vmatprep.mubr.msk.f32.mxu0 %vm158_vm1, %v4467_v61  ;;  %4006 = vmatprep.mubr.msk.f32.mxu1 %vm158_vm1, %v4505_v6 }
 0x153   :  { %v3747_v48 = vpop.f32.mrf.mxu0  ;;  %v3824_v35 = vpop.f32.mrf.mxu1  ;;  %3930 = vmatmul.mubr.msk.f32.gmra.mxu0 %vm158_vm1, %v4475_v63  ;;  %4007 = vmatmul.mubr.msk.f32.gmra.mxu1 %vm158_vm1, %v4517_v8 }
 0x154   :  { %v405_v52 = vadd.f32 %v3747_v48, %v4728_v31  ;;  %v784_v37 = vadd.f32 %v3824_v35, %v4733_v33  ;;  %3932 = vmatprep.mubr.msk.f32.mxu0 %vm158_vm1, %v4481_v0  ;;  %4009 = vmatprep.mubr.msk.f32.mxu1 %vm158_vm1, %v4531_v41  ;;  %v4849_v0 = vpop.trf.xlu1  ;;  %v6645_v35 = vld [vmem:[#allocation16_spill] sm:$0xff] }
 0x155   :  { %v399_v61 = vpop.f32.mrf.mxu0  ;;  %v778_v39 = vpop.f32.mrf.mxu1 }
 0x156   :  { %634 = vst.msk [vmem:[%s6614_s3 + $0x28] sm:$0xff] %vm628_vm2, %v405_v52  ;;  %2970 = vst.msk [vmem:[%s6614_s3 + $0x1b8] sm:$0xff] %vm628_vm2, %v784_v37  ;;  %v400_v63 = vadd.f32 %v4728_v31, %v399_v61  ;;  %v779_v42 = vadd.f32 %v4733_v33, %v778_v39  ;;  %v6646_v52 = vld [vmem:[#allocation2_spill] sm:$0xff]  ;;  %v6647_v39 = vld [vmem:[#allocation3_spill] sm:$0xff] }
 0x157   :  { %3933 = vmatmul.mubr.msk.f32.gmra.mxu0 %vm158_vm1, %v4489_v2  ;;  %4010 = vmatmul.mubr.msk.f32.gmra.mxu1 %vm158_vm1, %v4551_v14 }
 0x158   :  { %633 = vst.msk [vmem:[%s6614_s3 + $0x20] sm:$0xff] %vm628_vm2, %v400_v63  ;;  %2969 = vst.msk [vmem:[%s6614_s3 + $0x1b0] sm:$0xff] %vm628_vm2, %v779_v42  ;;  %3935 = vmatprep.mubr.msk.f32.mxu0 %vm158_vm1, %v4497_v4  ;;  %4012 = vmatprep.mubr.msk.f32.mxu1 %vm158_vm1, %v4565_v16 }
 0x15b   :  { %v3750_v2 = vpop.f32.mrf.mxu0  ;;  %v3827_v44 = vpop.f32.mrf.mxu1  ;;  %3936 = vmatmul.mubr.msk.f32.gmra.mxu0 %vm158_vm1, %v4503_v5  ;;  %4013 = vmatmul.mubr.msk.f32.gmra.mxu1 %vm158_vm1, %v4585_v26 }
 0x15c   :  { %v415_v46 = vadd.f32 %v3750_v2, %v4728_v31  ;;  %v794_v56 = vadd.f32 %v3827_v44, %v4733_v33  ;;  %3938 = vmatprep.mubr.msk.f32.mxu0 %vm158_vm1, %v4511_v7  ;;  %4015 = vmatprep.mubr.msk.f32.mxu1 %vm158_vm1, %v4599_v28  ;;  %v4871_v7 = vpop.trf.xlu1  ;;  %v6648_v2 = vld [vmem:[#allocation4_spill] sm:$0xff] }
 0x15d   :  { %v409_v4 = vpop.f32.mrf.mxu0  ;;  %v788_v58 = vpop.f32.mrf.mxu1 }
 0x15e   :  { %636 = vst.msk [vmem:[%s6614_s3 + $0x38] sm:$0xff] %vm628_vm2, %v415_v46  ;;  %2972 = vst.msk [vmem:[%s6614_s3 + $0x1c8] sm:$0xff] %vm628_vm2, %v794_v56  ;;  %v410_v5 = vadd.f32 %v4728_v31, %v409_v4  ;;  %v789_v48 = vadd.f32 %v4733_v33, %v788_v58 }
 0x15f   :  { %3939 = vmatmul.mubr.msk.f32.gmra.mxu0 %vm158_vm1, %v6645_v35  ;;  %4016 = vmatmul.mubr.msk.f32.gmra.mxu1 %vm158_vm1, %v4619_v40 }
 0x160   :  { %635 = vst.msk [vmem:[%s6614_s3 + $0x30] sm:$0xff] %vm628_vm2, %v410_v5  ;;  %2971 = vst.msk [vmem:[%s6614_s3 + $0x1c0] sm:$0xff] %vm628_vm2, %v789_v48  ;;  %3941 = vmatprep.mubr.msk.f32.mxu0 %vm158_vm1, %v6646_v52  ;;  %4018 = vmatprep.mubr.msk.f32.mxu1 %vm158_vm1, %v4633_v43  ;;  %v4899_v44 = vpop.trf.xlu1  ;;  %v6649_v5 = vld [vmem:[#allocation5_spill] sm:$0xff] }
 0x163   :  { %v3753_v37 = vpop.f32.mrf.mxu0  ;;  %v3830_v61 = vpop.f32.mrf.mxu1  ;;  %3942 = vmatmul.mubr.msk.f32.gmra.mxu0 %vm158_vm1, %v6647_v39  ;;  %4019 = vmatmul.mubr.msk.f32.gmra.mxu1 %vm158_vm1, %v4657_v13 }
 0x164   :  { %v425_v63 = vadd.f32 %v3753_v37, %v4728_v31  ;;  %v804_v42 = vadd.f32 %v3830_v61, %v4733_v33  ;;  %3944 = vmatprep.mubr.msk.f32.mxu0 %vm158_vm1, %v6648_v2  ;;  %4021 = vmatprep.mubr.msk.f32.mxu1 %vm158_vm1, %v4671_v19  ;;  %v4927_v48 = vpop.trf.xlu1  ;;  %v6650_v37 = vld [vmem:[#allocation6_spill] sm:$0xff] }
 0x165   :  { %v419_v46 = vpop.f32.mrf.mxu0  ;;  %v798_v56 = vpop.f32.mrf.mxu1 }
 0x166   :  { %638 = vst.msk [vmem:[%s6614_s3 + $0x48] sm:$0xff] %vm628_vm2, %v425_v63  ;;  %2974 = vst.msk [vmem:[%s6614_s3 + $0x1d8] sm:$0xff] %vm628_vm2, %v804_v42  ;;  %v420_v4 = vadd.f32 %v4728_v31, %v419_v46  ;;  %v799_v58 = vadd.f32 %v4733_v33, %v798_v56  ;;  %v6651_v63 = vld [vmem:[#allocation7_spill] sm:$0xff]  ;;  %v6652_v56 = vld [vmem:[#allocation8_spill] sm:$0xff] }
 0x167   :  { %3945 = vmatmul.mubr.msk.f32.gmra.mxu0 %vm158_vm1, %v6649_v5  ;;  %4022 = vmatmul.mubr.msk.f32.gmra.mxu1 %vm158_vm1, %v4691_v23 }
 0x168   :  { %637 = vst.msk [vmem:[%s6614_s3 + $0x40] sm:$0xff] %vm628_vm2, %v420_v4  ;;  %2973 = vst.msk [vmem:[%s6614_s3 + $0x1d0] sm:$0xff] %vm628_vm2, %v799_v58  ;;  %3947 = vmatprep.mubr.msk.f32.mxu0 %vm158_vm1, %v4295_v20  ;;  %4024 = vmatprep.mubr.msk.f32.mxu1 %vm158_vm1, %v4703_v27  ;;  %v6653_v4 = vld [vmem:[#allocation9_spill] sm:$0xff]  ;;  %v4965_v58 = vpop.trf.xlu1 }
 0x16b   :  { %v3756_v35 = vpop.f32.mrf.mxu0  ;;  %v3833_v52 = vpop.f32.mrf.mxu1  ;;  %3948 = vmatmul.mubr.msk.f32.gmra.mxu0 %vm158_vm1, %v6650_v37  ;;  %4025 = vmatmul.mubr.msk.f32.gmra.mxu1 %vm158_vm1, %v4723_v30 }
 0x16c   :  { %v435_v61 = vadd.f32 %v3756_v35, %v4728_v31  ;;  %v814_v39 = vadd.f32 %v3833_v52, %v4733_v33  ;;  %3950 = vmatprep.mubr.msk.f32.mxu0 %vm158_vm1, %v6651_v63  ;;  %4027 = vmatprep.mubr.msk.f32.mxu1 %vm158_vm1, %v4755_v50  ;;  %v6654_v52 = vld [vmem:[#allocation10_spill] sm:$0xff] }
 0x16d   :  { %v429_v20 = vpop.f32.mrf.mxu0  ;;  %v808_v42 = vpop.f32.mrf.mxu1 }
 0x16e   :  { %640 = vst.msk [vmem:[%s6614_s3 + $0x58] sm:$0xff] %vm628_vm2, %v435_v61  ;;  %2976 = vst.msk [vmem:[%s6614_s3 + $0x1e8] sm:$0xff] %vm628_vm2, %v814_v39  ;;  %v430_v2 = vadd.f32 %v4728_v31, %v429_v20  ;;  %v809_v46 = vadd.f32 %v4733_v33, %v808_v42 }
 0x16f   :  { %3951 = vmatmul.mubr.msk.f32.gmra.mxu0 %vm158_vm1, %v6652_v56  ;;  %4028 = vmatmul.mubr.msk.f32.gmra.mxu1 %vm158_vm1, %v4783_v54  ;;  %v5005_v56 = vpop.trf.xlu0 }
 0x170   :  { %639 = vst.msk [vmem:[%s6614_s3 + $0x50] sm:$0xff] %vm628_vm2, %v430_v2  ;;  %2975 = vst.msk [vmem:[%s6614_s3 + $0x1e0] sm:$0xff] %vm628_vm2, %v809_v46  ;;  %3953 = vmatprep.mubr.msk.f32.mxu0 %vm158_vm1, %v6653_v4  ;;  %4030 = vmatprep.mubr.msk.f32.mxu1 %vm158_vm1, %v4811_v59  ;;  %v6655_v2 = vld [vmem:[#allocation11_spill] sm:$0xff]  ;;  %v6656_v46 = vld [vmem:[#allocation12_spill] sm:$0xff] }
 0x173   :  { %v3759_v5 = vpop.f32.mrf.mxu0  ;;  %v3836_v35 = vpop.f32.mrf.mxu1  ;;  %3954 = vmatmul.mubr.msk.f32.gmra.mxu0 %vm158_vm1, %v6654_v52  ;;  %4031 = vmatmul.mubr.msk.f32.gmra.mxu1 %vm158_vm1, %v4849_v0 }
 0x174   :  { %v445_v37 = vadd.f32 %v3759_v5, %v4728_v31  ;;  %v824_v61 = vadd.f32 %v3836_v35, %v4733_v33  ;;  %3956 = vmatprep.mubr.msk.f32.mxu0 %vm158_vm1, %v4357_v34  ;;  %4033 = vmatprep.mubr.msk.f32.mxu1 %vm158_vm1, %v4871_v7  ;;  %v4987_v34 = vpop.trf.xlu1  ;;  %v6657_v35 = vld [vmem:[#allocation13_spill] sm:$0xff] }
 0x175   :  { %v439_v39 = vpop.f32.mrf.mxu0  ;;  %v818_v63 = vpop.f32.mrf.mxu1 }
 0x176   :  { %642 = vst.msk [vmem:[%s6614_s3 + $0x68] sm:$0xff] %vm628_vm2, %v445_v37  ;;  %2978 = vst.msk [vmem:[%s6614_s3 + $0x1f8] sm:$0xff] %vm628_vm2, %v824_v61  ;;  %v440_v20 = vadd.f32 %v4728_v31, %v439_v39  ;;  %v819_v42 = vadd.f32 %v4733_v33, %v818_v63  ;;  %v6658_v61 = vld [vmem:[#allocation14_spill] sm:$0xff] }
 0x177   :  { %3957 = vmatmul.mubr.msk.f32.gmra.mxu0 %vm158_vm1, %v6655_v2  ;;  %4034 = vmatmul.mubr.msk.f32.gmra.mxu1 %vm158_vm1, %v4899_v44 }
 0x178   :  { %641 = vst.msk [vmem:[%s6614_s3 + $0x60] sm:$0xff] %vm628_vm2, %v440_v20  ;;  %2977 = vst.msk [vmem:[%s6614_s3 + $0x1f0] sm:$0xff] %vm628_vm2, %v819_v42  ;;  %3959 = vmatprep.mubr.msk.f32.mxu0 %vm158_vm1, %v6656_v46  ;;  %4036 = vmatprep.mubr.msk.f32.mxu1 %vm158_vm1, %v4927_v48  ;;  %v5017_v39 = vpop.trf.xlu1  ;;  %v6659_v46 = vld [vmem:[#allocation15_spill] sm:$0xff] }
 0x17b   :  { %v3762_v4 = vpop.f32.mrf.mxu0  ;;  %v3839_v5 = vpop.f32.mrf.mxu1  ;;  %3960 = vmatmul.mubr.msk.f32.gmra.mxu0 %vm158_vm1, %v6657_v35  ;;  %4037 = vmatmul.mubr.msk.f32.gmra.mxu1 %vm158_vm1, %v4965_v58 }
 0x17c   :  { %v455_v52 = vadd.f32 %v3762_v4, %v4728_v31  ;;  %v834_v37 = vadd.f32 %v3839_v5, %v4733_v33  ;;  %3962 = vmatprep.mubr.msk.f32.mxu0 %vm158_vm1, %v6658_v61  ;;  %4039 = vmatprep.mubr.msk.f32.mxu1 %vm158_vm1, %v4987_v34  ;;  %v5045_v4 = vpop.trf.xlu0 }
 0x17d   :  { %v449_v63 = vpop.f32.mrf.mxu0  ;;  %v828_v20 = vpop.f32.mrf.mxu1 }
 0x17e   :  { %644 = vst.msk [vmem:[%s6614_s3 + $0x78] sm:$0xff] %vm628_vm2, %v455_v52  ;;  %2980 = vst.msk [vmem:[%s6614_s3 + $0x208] sm:$0xff] %vm628_vm2, %v834_v37  ;;  %v450_v42 = vadd.f32 %v4728_v31, %v449_v63  ;;  %v829_v2 = vadd.f32 %v4733_v33, %v828_v20 }
 0x17f   :  { %3963 = vmatmul.mubr.msk.f32.gmra.mxu0 %vm158_vm1, %v6659_v46  ;;  %4040 = vmatmul.mubr.msk.f32.gmra.mxu1 %vm158_vm1, %v5017_v39 }
 0x180   :  { %643 = vst.msk [vmem:[%s6614_s3 + $0x70] sm:$0xff] %vm628_vm2, %v450_v42  ;;  %2979 = vst.msk [vmem:[%s6614_s3 + $0x200] sm:$0xff] %vm628_vm2, %v829_v2  ;;  %3965 = vmatprep.mubr.msk.f32.mxu0 %vm158_vm1, %v4407_v47  ;;  %4042 = vmatprep.mubr.msk.f32.mxu1 %vm158_vm1, %v5005_v56 }
 0x183   :  { %v3765_v5 = vpop.f32.mrf.mxu0  ;;  %v3842_v35 = vpop.f32.mrf.mxu1  ;;  %3966 = vmatmul.mubr.msk.f32.gmra.mxu0 %vm158_vm1, %v4415_v49  ;;  %4043 = vmatmul.mubr.msk.f32.gmra.mxu1 %vm158_vm1, %v5045_v4 }
 0x184   :  { %v465_v52 = vadd.f32 %v3765_v5, %v4728_v31  ;;  %v844_v37 = vadd.f32 %v3842_v35, %v4733_v33  ;;  %4047 = vmatprep.mubr.msk.f32.mxu0 %vm158_vm1, %v4529_v12  ;;  %4124 = vmatprep.mubr.msk.f32.mxu1 %vm158_vm1, %v4529_v12 }
 0x185   :  { %v459_v47 = vpop.f32.mrf.mxu0  ;;  %v838_v61 = vpop.f32.mrf.mxu1 }
 0x186   :  { %646 = vst.msk [vmem:[%s6614_s3 + $0x88] sm:$0xff] %vm628_vm2, %v465_v52  ;;  %2982 = vst.msk [vmem:[%s6614_s3 + $0x218] sm:$0xff] %vm628_vm2, %v844_v37  ;;  %v460_v49 = vadd.f32 %v4728_v31, %v459_v47  ;;  %v839_v63 = vadd.f32 %v4733_v33, %v838_v61 }
 0x187   :  { %4048 = vmatmul.mubr.msk.f32.vlgmr.msra.gmra.mxu0 %vm158_vm1, %v4541_v9  ;;  %4125 = vmatmul.mubr.msk.f32.vlgmr.msra.gmra.mxu1 %vm158_vm1, %v4541_v9 }
 0x188   :  { %645 = vst.msk [vmem:[%s6614_s3 + $0x80] sm:$0xff] %vm628_vm2, %v460_v49  ;;  %2981 = vst.msk [vmem:[%s6614_s3 + $0x210] sm:$0xff] %vm628_vm2, %v839_v63  ;;  %4050 = vmatprep.mubr.msk.f32.mxu0 %vm158_vm1, %v4553_v11  ;;  %4127 = vmatprep.mubr.msk.f32.mxu1 %vm158_vm1, %v4553_v11 }
 0x18b   :  { %v3768_v12 = vpop.f32.mrf.mxu0  ;;  %v3845_v20 = vpop.f32.mrf.mxu1  ;;  %4051 = vmatmul.mubr.msk.f32.gmra.mxu0 %vm158_vm1, %v4563_v18  ;;  %4128 = vmatmul.mubr.msk.f32.gmra.mxu1 %vm158_vm1, %v4563_v18 }
 0x18c   :  { %v475_v9 = vadd.f32 %v3768_v12, %v4728_v31  ;;  %v854_v42 = vadd.f32 %v3845_v20, %v4733_v33  ;;  %4053 = vmatprep.mubr.msk.f32.mxu0 %vm158_vm1, %v4575_v22  ;;  %4130 = vmatprep.mubr.msk.f32.mxu1 %vm158_vm1, %v4575_v22 }
 0x18d   :  { %v469_v2 = vpop.f32.mrf.mxu0  ;;  %v848_v11 = vpop.f32.mrf.mxu1 }
 0x18e   :  { %648 = vst.msk [vmem:[%s6614_s3 + $0x98] sm:$0xff] %vm628_vm2, %v475_v9  ;;  %2984 = vst.msk [vmem:[%s6614_s3 + $0x228] sm:$0xff] %vm628_vm2, %v854_v42  ;;  %v470_v18 = vadd.f32 %v4728_v31, %v469_v2  ;;  %v849_v46 = vadd.f32 %v4733_v33, %v848_v11 }
 0x18f   :  { %4054 = vmatmul.mubr.msk.f32.gmra.mxu0 %vm158_vm1, %v4587_v24  ;;  %4131 = vmatmul.mubr.msk.f32.gmra.mxu1 %vm158_vm1, %v4587_v24 }
 0x190   :  { %647 = vst.msk [vmem:[%s6614_s3 + $0x90] sm:$0xff] %vm628_vm2, %v470_v18  ;;  %2983 = vst.msk [vmem:[%s6614_s3 + $0x220] sm:$0xff] %vm628_vm2, %v849_v46  ;;  %4056 = vmatprep.mubr.msk.f32.mxu0 %vm158_vm1, %v4597_v32  ;;  %4133 = vmatprep.mubr.msk.f32.mxu1 %vm158_vm1, %v4597_v32 }
 0x193   :  { %v3771_v22 = vpop.f32.mrf.mxu0  ;;  %v3848_v5 = vpop.f32.mrf.mxu1  ;;  %4057 = vmatmul.mubr.msk.f32.gmra.mxu0 %vm158_vm1, %v4609_v36  ;;  %4134 = vmatmul.mubr.msk.f32.gmra.mxu1 %vm158_vm1, %v4609_v36 }
 0x194   :  { %v485_v24 = vadd.f32 %v3771_v22, %v4728_v31  ;;  %v864_v35 = vadd.f32 %v3848_v5, %v4733_v33  ;;  %4059 = vmatprep.mubr.msk.f32.mxu0 %vm158_vm1, %v4621_v38  ;;  %4136 = vmatprep.mubr.msk.f32.mxu1 %vm158_vm1, %v4621_v38 }
 0x195   :  { %v479_v52 = vpop.f32.mrf.mxu0  ;;  %v858_v32 = vpop.f32.mrf.mxu1 }
 0x196   :  { %650 = vst.msk [vmem:[%s6614_s3 + $0xa8] sm:$0xff] %vm628_vm2, %v485_v24  ;;  %2986 = vst.msk [vmem:[%s6614_s3 + $0x238] sm:$0xff] %vm628_vm2, %v864_v35  ;;  %v480_v36 = vadd.f32 %v4728_v31, %v479_v52  ;;  %v859_v37 = vadd.f32 %v4733_v33, %v858_v32 }
 0x197   :  { %4060 = vmatmul.mubr.msk.f32.gmra.mxu0 %vm158_vm1, %v4631_v45  ;;  %4137 = vmatmul.mubr.msk.f32.gmra.mxu1 %vm158_vm1, %v4631_v45 }
 0x198   :  { %649 = vst.msk [vmem:[%s6614_s3 + $0xa0] sm:$0xff] %vm628_vm2, %v480_v36  ;;  %2985 = vst.msk [vmem:[%s6614_s3 + $0x230] sm:$0xff] %vm628_vm2, %v859_v37  ;;  %4062 = vmatprep.mubr.msk.f32.mxu0 %vm158_vm1, %v4647_v10  ;;  %4139 = vmatprep.mubr.msk.f32.mxu1 %vm158_vm1, %v4647_v10 }
 0x19b   :  { %v3774_v38 = vpop.f32.mrf.mxu0  ;;  %v3851_v47 = vpop.f32.mrf.mxu1  ;;  %4063 = vmatmul.mubr.msk.f32.gmra.mxu0 %vm158_vm1, %v4659_v15  ;;  %4140 = vmatmul.mubr.msk.f32.gmra.mxu1 %vm158_vm1, %v4659_v15 }
 0x19c   :  { %v495_v45 = vadd.f32 %v3774_v38, %v4728_v31  ;;  %v874_v61 = vadd.f32 %v3851_v47, %v4733_v33  ;;  %4065 = vmatprep.mubr.msk.f32.mxu0 %vm158_vm1, %v4669_v17  ;;  %4142 = vmatprep.mubr.msk.f32.mxu1 %vm158_vm1, %v4669_v17 }
 0x19d   :  { %v489_v49 = vpop.f32.mrf.mxu0  ;;  %v868_v10 = vpop.f32.mrf.mxu1 }
 0x19e   :  { %652 = vst.msk [vmem:[%s6614_s3 + $0xb8] sm:$0xff] %vm628_vm2, %v495_v45  ;;  %2988 = vst.msk [vmem:[%s6614_s3 + $0x248] sm:$0xff] %vm628_vm2, %v874_v61  ;;  %v490_v15 = vadd.f32 %v4728_v31, %v489_v49  ;;  %v869_v63 = vadd.f32 %v4733_v33, %v868_v10 }
 0x19f   :  { %4066 = vmatmul.mubr.msk.f32.gmra.mxu0 %vm158_vm1, %v4681_v21  ;;  %4143 = vmatmul.mubr.msk.f32.gmra.mxu1 %vm158_vm1, %v4681_v21 }
 0x1a0   :  { %651 = vst.msk [vmem:[%s6614_s3 + $0xb0] sm:$0xff] %vm628_vm2, %v490_v15  ;;  %2987 = vst.msk [vmem:[%s6614_s3 + $0x240] sm:$0xff] %vm628_vm2, %v869_v63  ;;  %4068 = vmatprep.mubr.msk.f32.mxu0 %vm158_vm1, %v4693_v25  ;;  %4145 = vmatprep.mubr.msk.f32.mxu1 %vm158_vm1, %v4693_v25 }
 0x1a3   :  { %v3777_v17 = vpop.f32.mrf.mxu0  ;;  %v3854_v12 = vpop.f32.mrf.mxu1  ;;  %4069 = vmatmul.mubr.msk.f32.gmra.mxu0 %vm158_vm1, %v4713_v29  ;;  %4146 = vmatmul.mubr.msk.f32.gmra.mxu1 %vm158_vm1, %v4713_v29 }
 0x1a4   :  { %v505_v21 = vadd.f32 %v3777_v17, %v4728_v31  ;;  %v884_v20 = vadd.f32 %v3854_v12, %v4733_v33  ;;  %4071 = vmatprep.mubr.msk.f32.mxu0 %vm158_vm1, %v4423_v51  ;;  %4148 = vmatprep.mubr.msk.f32.mxu1 %vm158_vm1, %v4423_v51 }
 0x1a5   :  { %v499_v9 = vpop.f32.mrf.mxu0  ;;  %v878_v25 = vpop.f32.mrf.mxu1 }
 0x1a6   :  { %654 = vst.msk [vmem:[%s6614_s3 + $0xc8] sm:$0xff] %vm628_vm2, %v505_v21  ;;  %2990 = vst.msk [vmem:[%s6614_s3 + $0x258] sm:$0xff] %vm628_vm2, %v884_v20  ;;  %v500_v29 = vadd.f32 %v4728_v31, %v499_v9  ;;  %v879_v42 = vadd.f32 %v4733_v33, %v878_v25 }
 0x1a7   :  { %4072 = vmatmul.mubr.msk.f32.gmra.mxu0 %vm158_vm1, %v4431_v53  ;;  %4149 = vmatmul.mubr.msk.f32.gmra.mxu1 %vm158_vm1, %v4431_v53 }
 0x1a8   :  { %653 = vst.msk [vmem:[%s6614_s3 + $0xc0] sm:$0xff] %vm628_vm2, %v500_v29  ;;  %2989 = vst.msk [vmem:[%s6614_s3 + $0x250] sm:$0xff] %vm628_vm2, %v879_v42  ;;  %4074 = vmatprep.mubr.msk.f32.mxu0 %vm158_vm1, %v4439_v55  ;;  %4151 = vmatprep.mubr.msk.f32.mxu1 %vm158_vm1, %v4439_v55 }
 0x1ab   :  { %v3780_v51 = vpop.f32.mrf.mxu0  ;;  %v3857_v2 = vpop.f32.mrf.mxu1  ;;  %4075 = vmatmul.mubr.msk.f32.gmra.mxu0 %vm158_vm1, %v4451_v57  ;;  %4152 = vmatmul.mubr.msk.f32.gmra.mxu1 %vm158_vm1, %v4451_v57 }
 0x1ac   :  { %v515_v53 = vadd.f32 %v3780_v51, %v4728_v31  ;;  %v894_v11 = vadd.f32 %v3857_v2, %v4733_v33  ;;  %4077 = vmatprep.mubr.msk.f32.mxu0 %vm158_vm1, %v4461_v60  ;;  %4154 = vmatprep.mubr.msk.f32.mxu1 %vm158_vm1, %v4461_v60 }
 0x1ad   :  { %v509_v18 = vpop.f32.mrf.mxu0  ;;  %v888_v55 = vpop.f32.mrf.mxu1 }
 0x1ae   :  { %656 = vst.msk [vmem:[%s6614_s3 + $0xd8] sm:$0xff] %vm628_vm2, %v515_v53  ;;  %2992 = vst.msk [vmem:[%s6614_s3 + $0x268] sm:$0xff] %vm628_vm2, %v894_v11  ;;  %v510_v57 = vadd.f32 %v4728_v31, %v509_v18  ;;  %v889_v46 = vadd.f32 %v4733_v33, %v888_v55 }
 0x1af   :  { %4078 = vmatmul.mubr.msk.f32.gmra.mxu0 %vm158_vm1, %v4473_v62  ;;  %4155 = vmatmul.mubr.msk.f32.gmra.mxu1 %vm158_vm1, %v4473_v62 }
 0x1b0   :  { %655 = vst.msk [vmem:[%s6614_s3 + $0xd0] sm:$0xff] %vm628_vm2, %v510_v57  ;;  %2991 = vst.msk [vmem:[%s6614_s3 + $0x260] sm:$0xff] %vm628_vm2, %v889_v46  ;;  %4080 = vmatprep.mubr.msk.f32.mxu0 %vm158_vm1, %v4483_v1  ;;  %4157 = vmatprep.mubr.msk.f32.mxu1 %vm158_vm1, %v4483_v1 }
 0x1b3   :  { %v3783_v60 = vpop.f32.mrf.mxu0  ;;  %v3860_v22 = vpop.f32.mrf.mxu1  ;;  %4081 = vmatmul.mubr.msk.f32.gmra.mxu0 %vm158_vm1, %v4495_v3  ;;  %4158 = vmatmul.mubr.msk.f32.gmra.mxu1 %vm158_vm1, %v4495_v3 }
 0x1b4   :  { %v525_v62 = vadd.f32 %v3783_v60, %v4728_v31  ;;  %v904_v5 = vadd.f32 %v3860_v22, %v4733_v33  ;;  %4083 = vmatprep.mubr.msk.f32.mxu0 %vm158_vm1, %v4505_v6  ;;  %4160 = vmatprep.mubr.msk.f32.mxu1 %vm158_vm1, %v4505_v6 }
 0x1b5   :  { %v519_v24 = vpop.f32.mrf.mxu0  ;;  %v898_v1 = vpop.f32.mrf.mxu1 }
 0x1b6   :  { %658 = vst.msk [vmem:[%s6614_s3 + $0xe8] sm:$0xff] %vm628_vm2, %v525_v62  ;;  %2994 = vst.msk [vmem:[%s6614_s3 + $0x278] sm:$0xff] %vm628_vm2, %v904_v5  ;;  %v520_v3 = vadd.f32 %v4728_v31, %v519_v24  ;;  %v899_v35 = vadd.f32 %v4733_v33, %v898_v1 }
 0x1b7   :  { %4084 = vmatmul.mubr.msk.f32.gmra.mxu0 %vm158_vm1, %v4517_v8  ;;  %4161 = vmatmul.mubr.msk.f32.gmra.mxu1 %vm158_vm1, %v4517_v8 }
 0x1b8   :  { %657 = vst.msk [vmem:[%s6614_s3 + $0xe0] sm:$0xff] %vm628_vm2, %v520_v3  ;;  %2993 = vst.msk [vmem:[%s6614_s3 + $0x270] sm:$0xff] %vm628_vm2, %v899_v35  ;;  %4086 = vmatprep.mubr.msk.f32.mxu0 %vm158_vm1, %v4531_v41  ;;  %4163 = vmatprep.mubr.msk.f32.mxu1 %vm158_vm1, %v4531_v41 }
 0x1bb   :  { %v3786_v6 = vpop.f32.mrf.mxu0  ;;  %v3863_v52 = vpop.f32.mrf.mxu1  ;;  %4087 = vmatmul.mubr.msk.f32.gmra.mxu0 %vm158_vm1, %v4551_v14  ;;  %4164 = vmatmul.mubr.msk.f32.gmra.mxu1 %vm158_vm1, %v4551_v14 }
 0x1bc   :  { %v535_v8 = vadd.f32 %v3786_v6, %v4728_v31  ;;  %v914_v32 = vadd.f32 %v3863_v52, %v4733_v33  ;;  %4089 = vmatprep.mubr.msk.f32.mxu0 %vm158_vm1, %v4565_v16  ;;  %4166 = vmatprep.mubr.msk.f32.mxu1 %vm158_vm1, %v4565_v16 }
 0x1bd   :  { %v529_v36 = vpop.f32.mrf.mxu0  ;;  %v908_v41 = vpop.f32.mrf.mxu1 }
 0x1be   :  { %660 = vst.msk [vmem:[%s6614_s3 + $0xf8] sm:$0xff] %vm628_vm2, %v535_v8  ;;  %2996 = vst.msk [vmem:[%s6614_s3 + $0x288] sm:$0xff] %vm628_vm2, %v914_v32  ;;  %v530_v14 = vadd.f32 %v4728_v31, %v529_v36  ;;  %v909_v37 = vadd.f32 %v4733_v33, %v908_v41 }
 0x1bf   :  { %v3789_v38 = vpop.f32.mrf.mxu0  ;;  %v3866_v47 = vpop.f32.mrf.mxu1  ;;  %4090 = vmatmul.mubr.msk.f32.gmra.mxu0 %vm158_vm1, %v4585_v26  ;;  %4167 = vmatmul.mubr.msk.f32.gmra.mxu1 %vm158_vm1, %v4585_v26 }
 0x1c0   :  { %659 = vst.msk [vmem:[%s6614_s3 + $0xf0] sm:$0xff] %vm628_vm2, %v530_v14  ;;  %2995 = vst.msk [vmem:[%s6614_s3 + $0x280] sm:$0xff] %vm628_vm2, %v909_v37  ;;  %v545_v16 = vadd.f32 %v3789_v38, %v4728_v31  ;;  %v924_v45 = vadd.f32 %v3866_v47, %v4733_v33  ;;  %4092 = vmatprep.mubr.msk.f32.mxu0 %vm158_vm1, %v4599_v28  ;;  %4169 = vmatprep.mubr.msk.f32.mxu1 %vm158_vm1, %v4599_v28 }
 0x1c1   :  { %v539_v26 = vpop.f32.mrf.mxu0  ;;  %v918_v61 = vpop.f32.mrf.mxu1 }
 0x1c2   :  { %662 = vst.msk [vmem:[%s6614_s3 + $0x108] sm:$0xff] %vm628_vm2, %v545_v16  ;;  %2998 = vst.msk [vmem:[%s6614_s3 + $0x298] sm:$0xff] %vm628_vm2, %v924_v45  ;;  %v540_v49 = vadd.f32 %v4728_v31, %v539_v26  ;;  %v919_v10 = vadd.f32 %v4733_v33, %v918_v61 }
 0x1c3   :  { %v3792_v15 = vpop.f32.mrf.mxu0  ;;  %v3869_v63 = vpop.f32.mrf.mxu1  ;;  %4093 = vmatmul.mubr.msk.f32.gmra.mxu0 %vm158_vm1, %v4619_v40  ;;  %4170 = vmatmul.mubr.msk.f32.gmra.mxu1 %vm158_vm1, %v4619_v40 }
 0x1c4   :  { %661 = vst.msk [vmem:[%s6614_s3 + $0x100] sm:$0xff] %vm628_vm2, %v540_v49  ;;  %2997 = vst.msk [vmem:[%s6614_s3 + $0x290] sm:$0xff] %vm628_vm2, %v919_v10  ;;  %v555_v28 = vadd.f32 %v3792_v15, %v4728_v31  ;;  %v934_v17 = vadd.f32 %v3869_v63, %v4733_v33  ;;  %4095 = vmatprep.mubr.msk.f32.mxu0 %vm158_vm1, %v4633_v43  ;;  %4172 = vmatprep.mubr.msk.f32.mxu1 %vm158_vm1, %v4633_v43 }
 0x1c5   :  { %v549_v40 = vpop.f32.mrf.mxu0  ;;  %v928_v12 = vpop.f32.mrf.mxu1 }
 0x1c6   :  { %664 = vst.msk [vmem:[%s6614_s3 + $0x118] sm:$0xff] %vm628_vm2, %v555_v28  ;;  %3000 = vst.msk [vmem:[%s6614_s3 + $0x2a8] sm:$0xff] %vm628_vm2, %v934_v17  ;;  %v550_v21 = vadd.f32 %v4728_v31, %v549_v40  ;;  %v929_v20 = vadd.f32 %v4733_v33, %v928_v12  ;;  %v5564_v40 = vld [vmem:[%s6613_s2 + $0x2] ss:$0 sm:$0xff] }
 0x1c7   :  { %v3795_v9 = vpop.f32.mrf.mxu0  ;;  %v3872_v25 = vpop.f32.mrf.mxu1  ;;  %4096 = vmatmul.mubr.msk.f32.gmra.mxu0 %vm158_vm1, %v4657_v13  ;;  %4173 = vmatmul.mubr.msk.f32.gmra.mxu1 %vm158_vm1, %v4657_v13 }
 0x1c8   :  { %663 = vst.msk [vmem:[%s6614_s3 + $0x110] sm:$0xff] %vm628_vm2, %v550_v21  ;;  %2999 = vst.msk [vmem:[%s6614_s3 + $0x2a0] sm:$0xff] %vm628_vm2, %v929_v20  ;;  %v565_v43 = vadd.f32 %v3795_v9, %v4728_v31  ;;  %v944_v29 = vadd.f32 %v3872_v25, %v4733_v33  ;;  %4098 = vmatprep.mubr.msk.f32.mxu0 %vm158_vm1, %v4671_v19  ;;  %4175 = vmatprep.mubr.msk.f32.mxu1 %vm158_vm1, %v4671_v19 }
 0x1c9   :  { %v559_v13 = vpop.f32.mrf.mxu0  ;;  %v938_v42 = vpop.f32.mrf.mxu1 }
 0x1ca   :  { %666 = vst.msk [vmem:[%s6614_s3 + $0x128] sm:$0xff] %vm628_vm2, %v565_v43  ;;  %3002 = vst.msk [vmem:[%s6614_s3 + $0x2b8] sm:$0xff] %vm628_vm2, %v944_v29  ;;  %v560_v51 = vadd.f32 %v4728_v31, %v559_v13  ;;  %v939_v2 = vadd.f32 %v4733_v33, %v938_v42 }
 0x1cb   :  { %v3798_v53 = vpop.f32.mrf.mxu0  ;;  %v3875_v11 = vpop.f32.mrf.mxu1  ;;  %4099 = vmatmul.mubr.msk.f32.gmra.mxu0 %vm158_vm1, %v4691_v23  ;;  %4176 = vmatmul.mubr.msk.f32.gmra.mxu1 %vm158_vm1, %v4691_v23 }
 0x1cc   :  { %665 = vst.msk [vmem:[%s6614_s3 + $0x120] sm:$0xff] %vm628_vm2, %v560_v51  ;;  %3001 = vst.msk [vmem:[%s6614_s3 + $0x2b0] sm:$0xff] %vm628_vm2, %v939_v2  ;;  %v575_v19 = vadd.f32 %v3798_v53, %v4728_v31  ;;  %v954_v18 = vadd.f32 %v3875_v11, %v4733_v33  ;;  %4101 = vmatprep.mubr.msk.f32.mxu0 %vm158_vm1, %v4703_v27  ;;  %4178 = vmatprep.mubr.msk.f32.mxu1 %vm158_vm1, %v4703_v27 }
 0x1cd   :  { %v569_v23 = vpop.f32.mrf.mxu0  ;;  %v948_v55 = vpop.f32.mrf.mxu1 }
 0x1ce   :  { %668 = vst.msk [vmem:[%s6614_s3 + $0x138] sm:$0xff] %vm628_vm2, %v575_v19  ;;  %3004 = vst.msk [vmem:[%s6614_s3 + $0x2c8] sm:$0xff] %vm628_vm2, %v954_v18  ;;  %v570_v57 = vadd.f32 %v4728_v31, %v569_v23  ;;  %v949_v46 = vadd.f32 %v4733_v33, %v948_v55 }
 0x1cf   :  { %v3801_v60 = vpop.f32.mrf.mxu0  ;;  %v3878_v22 = vpop.f32.mrf.mxu1  ;;  %4102 = vmatmul.mubr.msk.f32.gmra.mxu0 %vm158_vm1, %v4723_v30  ;;  %4179 = vmatmul.mubr.msk.f32.gmra.mxu1 %vm158_vm1, %v4723_v30 }
 0x1d0   :  { %667 = vst.msk [vmem:[%s6614_s3 + $0x130] sm:$0xff] %vm628_vm2, %v570_v57  ;;  %3003 = vst.msk [vmem:[%s6614_s3 + $0x2c0] sm:$0xff] %vm628_vm2, %v949_v46  ;;  %v585_v27 = vadd.f32 %v3801_v60, %v4728_v31  ;;  %v964_v62 = vadd.f32 %v3878_v22, %v4733_v33  ;;  %4104 = vmatprep.mubr.msk.f32.mxu0 %vm158_vm1, %v4755_v50  ;;  %4181 = vmatprep.mubr.msk.f32.mxu1 %vm158_vm1, %v4755_v50  ;;  %v5650_v22 = vld [vmem:[%s6613_s2] ss:$0 sm:$0xff] }
 0x1d1   :  { %v579_v30 = vpop.f32.mrf.mxu0  ;;  %v958_v5 = vpop.f32.mrf.mxu1 }
 0x1d2   :  { %670 = vst.msk [vmem:[%s6614_s3 + $0x148] sm:$0xff] %vm628_vm2, %v585_v27  ;;  %3006 = vst.msk [vmem:[%s6614_s3 + $0x2d8] sm:$0xff] %vm628_vm2, %v964_v62  ;;  %v580_v24 = vadd.f32 %v4728_v31, %v579_v30  ;;  %v959_v1 = vadd.f32 %v4733_v33, %v958_v5 }
 0x1d3   :  { %v3804_v3 = vpop.f32.mrf.mxu0  ;;  %v3881_v35 = vpop.f32.mrf.mxu1  ;;  %4105 = vmatmul.mubr.msk.f32.gmra.mxu0 %vm158_vm1, %v4783_v54  ;;  %4182 = vmatmul.mubr.msk.f32.gmra.mxu1 %vm158_vm1, %v4783_v54 }
 0x1d4   :  { %669 = vst.msk [vmem:[%s6614_s3 + $0x140] sm:$0xff] %vm628_vm2, %v580_v24  ;;  %3005 = vst.msk [vmem:[%s6614_s3 + $0x2d0] sm:$0xff] %vm628_vm2, %v959_v1  ;;  %v595_v50 = vadd.f32 %v3804_v3, %v4728_v31  ;;  %v974_v6 = vadd.f32 %v3881_v35, %v4733_v33  ;;  %4107 = vmatprep.mubr.msk.f32.mxu0 %vm158_vm1, %v4811_v59  ;;  %4184 = vmatprep.mubr.msk.f32.mxu1 %vm158_vm1, %v4811_v59 }
 0x1d5   :  { %v589_v54 = vpop.f32.mrf.mxu0  ;;  %v968_v52 = vpop.f32.mrf.mxu1 }
 0x1d6   :  { %672 = vst.msk [vmem:[%s6614_s3 + $0x158] sm:$0xff] %vm628_vm2, %v595_v50  ;;  %3008 = vst.msk [vmem:[%s6614_s3 + $0x2e8] sm:$0xff] %vm628_vm2, %v974_v6  ;;  %v590_v8 = vadd.f32 %v4728_v31, %v589_v54  ;;  %v969_v32 = vadd.f32 %v4733_v33, %v968_v52 }
 0x1d7   :  { %v3807_v36 = vpop.f32.mrf.mxu0  ;;  %v3884_v41 = vpop.f32.mrf.mxu1  ;;  %4108 = vmatmul.mubr.msk.f32.gmra.mxu0 %vm158_vm1, %v4849_v0  ;;  %4185 = vmatmul.mubr.msk.f32.gmra.mxu1 %vm158_vm1, %v4849_v0 }
 0x1d8   :  { %671 = vst.msk [vmem:[%s6614_s3 + $0x150] sm:$0xff] %vm628_vm2, %v590_v8  ;;  %3007 = vst.msk [vmem:[%s6614_s3 + $0x2e0] sm:$0xff] %vm628_vm2, %v969_v32  ;;  %v605_v59 = vadd.f32 %v3807_v36, %v4728_v31  ;;  %v984_v14 = vadd.f32 %v3884_v41, %v4733_v33  ;;  %4110 = vmatprep.mubr.msk.f32.mxu0 %vm158_vm1, %v4871_v7  ;;  %4187 = vmatprep.mubr.msk.f32.mxu1 %vm158_vm1, %v4871_v7 }
 0x1d9   :  { %v599_v0 = vpop.f32.mrf.mxu0  ;;  %v978_v37 = vpop.f32.mrf.mxu1 }
 0x1da   :  { %674 = vst.msk [vmem:[%s6614_s3 + $0x168] sm:$0xff] %vm628_vm2, %v605_v59  ;;  %3010 = vst.msk [vmem:[%s6614_s3 + $0x2f8] sm:$0xff] %vm628_vm2, %v984_v14  ;;  %v600_v38 = vadd.f32 %v4728_v31, %v599_v0  ;;  %v979_v47 = vadd.f32 %v4733_v33, %v978_v37 }
 0x1db   :  { %v3810_v16 = vpop.f32.mrf.mxu0  ;;  %v3887_v45 = vpop.f32.mrf.mxu1  ;;  %4111 = vmatmul.mubr.msk.f32.gmra.mxu0 %vm158_vm1, %v4899_v44  ;;  %4188 = vmatmul.mubr.msk.f32.gmra.mxu1 %vm158_vm1, %v4899_v44 }
 0x1dc   :  { %673 = vst.msk [vmem:[%s6614_s3 + $0x160] sm:$0xff] %vm628_vm2, %v600_v38  ;;  %3009 = vst.msk [vmem:[%s6614_s3 + $0x2f0] sm:$0xff] %vm628_vm2, %v979_v47  ;;  %v615_v7 = vadd.f32 %v3810_v16, %v4728_v31  ;;  %v994_v26 = vadd.f32 %v3887_v45, %v4733_v33  ;;  %4113 = vmatprep.mubr.msk.f32.mxu0 %vm158_vm1, %v4927_v48  ;;  %4190 = vmatprep.mubr.msk.f32.mxu1 %vm158_vm1, %v4927_v48 }
 0x1dd   :  { %v609_v44 = vpop.f32.mrf.mxu0  ;;  %v988_v61 = vpop.f32.mrf.mxu1 }
 0x1de   :  { %676 = vst.msk [vmem:[%s6614_s3 + $0x178] sm:$0xff] %vm628_vm2, %v615_v7  ;;  %3012 = vst.msk [vmem:[%s6614_s3 + $0x308] sm:$0xff] %vm628_vm2, %v994_v26  ;;  %v610_v49 = vadd.f32 %v4728_v31, %v609_v44  ;;  %v989_v10 = vadd.f32 %v4733_v33, %v988_v61 }
 0x1df   :  { %v3813_v15 = vpop.f32.mrf.mxu0  ;;  %v3890_v63 = vpop.f32.mrf.mxu1  ;;  %4114 = vmatmul.mubr.msk.f32.gmra.mxu0 %vm158_vm1, %v4965_v58  ;;  %4191 = vmatmul.mubr.msk.f32.gmra.mxu1 %vm158_vm1, %v4965_v58 }
 0x1e0   :  { %675 = vst.msk [vmem:[%s6614_s3 + $0x170] sm:$0xff] %vm628_vm2, %v610_v49  ;;  %3011 = vst.msk [vmem:[%s6614_s3 + $0x300] sm:$0xff] %vm628_vm2, %v989_v10  ;;  %v625_v48 = vadd.f32 %v3813_v15, %v4728_v31  ;;  %v1004_v28 = vadd.f32 %v3890_v63, %v4733_v33  ;;  %4116 = vmatprep.mubr.msk.f32.mxu0 %vm158_vm1, %v4987_v34  ;;  %4193 = vmatprep.mubr.msk.f32.mxu1 %vm158_vm1, %v4987_v34 }
 0x1e1   :  { %v619_v58 = vpop.f32.mrf.mxu0  ;;  %v998_v17 = vpop.f32.mrf.mxu1 }
 0x1e2   :  { %678 = vst.msk [vmem:[%s6614_s3 + $0x188] sm:$0xff] %vm628_vm2, %v625_v48  ;;  %3014 = vst.msk [vmem:[%s6614_s3 + $0x318] sm:$0xff] %vm628_vm2, %v1004_v28  ;;  %v620_v12 = vadd.f32 %v4728_v31, %v619_v58  ;;  %v999_v34 = vadd.f32 %v4733_v33, %v998_v17 }
 0x1e3   :  { %v3895_v21 = vpop.f32.mrf.mxu0  ;;  %v3972_v20 = vpop.f32.mrf.mxu1  ;;  %4117 = vmatmul.mubr.msk.f32.gmra.mxu0 %vm158_vm1, %v5017_v39  ;;  %4194 = vmatmul.mubr.msk.f32.gmra.mxu1 %vm158_vm1, %v5017_v39 }
 0x1e4   :  { %677 = vst.msk [vmem:[%s6614_s3 + $0x180] sm:$0xff] %vm628_vm2, %v620_v12  ;;  %3013 = vst.msk [vmem:[%s6614_s3 + $0x310] sm:$0xff] %vm628_vm2, %v999_v34  ;;  %v1143_v33 = vadd.f32 %v3895_v21, %v5564_v40  ;;  %v1807_v9 = vadd.f32 %v3972_v20, %v4728_v31  ;;  %4119 = vmatprep.mubr.msk.f32.mxu0 %vm158_vm1, %v5005_v56  ;;  %4196 = vmatprep.mubr.msk.f32.mxu1 %vm158_vm1, %v5005_v56 }
 0x1e5   :  { %v1137_v39 = vpop.f32.mrf.mxu0  ;;  %v1801_v25 = vpop.f32.mrf.mxu1 }
 0x1e6   :  { %3070 = vst.msk [vmem:[%s6614_s3 + $0x328] sm:$0xff] %vm628_vm2, %v1143_v33  ;;  %3174 = vst.msk [vmem:[%s6614_s3 + $0x4b8] sm:$0xff] %vm628_vm2, %v1807_v9  ;;  %v1138_v43 = vadd.f32 %v5564_v40, %v1137_v39  ;;  %v1802_v29 = vadd.f32 %v4728_v31, %v1801_v25 }
 0x1e7   :  { %v3898_v13 = vpop.f32.mrf.mxu0  ;;  %v3975_v42 = vpop.f32.mrf.mxu1  ;;  %4120 = vmatmul.mubr.msk.f32.gmra.mxu0 %vm158_vm1, %v5045_v4  ;;  %4197 = vmatmul.mubr.msk.f32.gmra.mxu1 %vm158_vm1, %v5045_v4 }
 0x1e8   :  { %3069 = vst.msk [vmem:[%s6614_s3 + $0x320] sm:$0xff] %vm628_vm2, %v1138_v43  ;;  %3173 = vst.msk [vmem:[%s6614_s3 + $0x4b0] sm:$0xff] %vm628_vm2, %v1802_v29  ;;  %v1153_v56 = vadd.f32 %v3898_v13, %v5564_v40  ;;  %v1817_v51 = vadd.f32 %v3975_v42, %v4728_v31 }
 0x1e9   :  { %v1147_v2 = vpop.f32.mrf.mxu0  ;;  %v1811_v53 = vpop.f32.mrf.mxu1 }
 0x1ea   :  { %3072 = vst.msk [vmem:[%s6614_s3 + $0x338] sm:$0xff] %vm628_vm2, %v1153_v56  ;;  %3176 = vst.msk [vmem:[%s6614_s3 + $0x4c8] sm:$0xff] %vm628_vm2, %v1817_v51  ;;  %v1148_v4 = vadd.f32 %v5564_v40, %v1147_v2  ;;  %v1812_v11 = vadd.f32 %v4728_v31, %v1811_v53 }
 0x1eb   :  { %v3901_v19 = vpop.f32.mrf.mxu0  ;;  %v3978_v18 = vpop.f32.mrf.mxu1 }
 0x1ec   :  { %3071 = vst.msk [vmem:[%s6614_s3 + $0x330] sm:$0xff] %vm628_vm2, %v1148_v4  ;;  %3175 = vst.msk [vmem:[%s6614_s3 + $0x4c0] sm:$0xff] %vm628_vm2, %v1812_v11  ;;  %v1163_v23 = vadd.f32 %v3901_v19, %v5564_v40  ;;  %v1827_v55 = vadd.f32 %v3978_v18, %v4728_v31 }
 0x1ed   :  { %v1157_v57 = vpop.f32.mrf.mxu0  ;;  %v1821_v46 = vpop.f32.mrf.mxu1 }
 0x1ee   :  { %3074 = vst.msk [vmem:[%s6614_s3 + $0x348] sm:$0xff] %vm628_vm2, %v1163_v23  ;;  %3178 = vst.msk [vmem:[%s6614_s3 + $0x4d8] sm:$0xff] %vm628_vm2, %v1827_v55  ;;  %v1158_v60 = vadd.f32 %v5564_v40, %v1157_v57  ;;  %v1822_v31 = vadd.f32 %v5650_v22, %v1821_v46 }
 0x1ef   :  { %v3904_v27 = vpop.f32.mrf.mxu0  ;;  %v3981_v62 = vpop.f32.mrf.mxu1 }
 0x1f0   :  { %3073 = vst.msk [vmem:[%s6614_s3 + $0x340] sm:$0xff] %vm628_vm2, %v1158_v60  ;;  %3177 = vst.msk [vmem:[%s6614_s3 + $0x4d0] sm:$0xff] %vm628_vm2, %v1822_v31  ;;  %v1173_v30 = vadd.f32 %v3904_v27, %v5564_v40  ;;  %v1837_v5 = vadd.f32 %v5650_v22, %v3981_v62 }
 0x1f1   :  { %v1167_v24 = vpop.f32.mrf.mxu0  ;;  %v1831_v1 = vpop.f32.mrf.mxu1 }
 0x1f2   :  { %3076 = vst.msk [vmem:[%s6614_s3 + $0x358] sm:$0xff] %vm628_vm2, %v1173_v30  ;;  %3180 = vst.msk [vmem:[%s6614_s3 + $0x4e8] sm:$0xff] %vm628_vm2, %v1837_v5  ;;  %v1168_v3 = vadd.f32 %v5564_v40, %v1167_v24  ;;  %v1832_v35 = vadd.f32 %v5650_v22, %v1831_v1 }
 0x1f3   :  { %v3907_v50 = vpop.f32.mrf.mxu0  ;;  %v3984_v6 = vpop.f32.mrf.mxu1 }
 0x1f4   :  { %3075 = vst.msk [vmem:[%s6614_s3 + $0x350] sm:$0xff] %vm628_vm2, %v1168_v3  ;;  %3179 = vst.msk [vmem:[%s6614_s3 + $0x4e0] sm:$0xff] %vm628_vm2, %v1832_v35  ;;  %v1183_v54 = vadd.f32 %v3907_v50, %v5564_v40  ;;  %v1847_v52 = vadd.f32 %v5650_v22, %v3984_v6 }
 0x1f5   :  { %v1177_v8 = vpop.f32.mrf.mxu0  ;;  %v1841_v32 = vpop.f32.mrf.mxu1 }
 0x1f6   :  { %3078 = vst.msk [vmem:[%s6614_s3 + $0x368] sm:$0xff] %vm628_vm2, %v1183_v54  ;;  %3182 = vst.msk [vmem:[%s6614_s3 + $0x4f8] sm:$0xff] %vm628_vm2, %v1847_v52  ;;  %v1178_v36 = vadd.f32 %v5564_v40, %v1177_v8  ;;  %v1842_v41 = vadd.f32 %v5650_v22, %v1841_v32 }
 0x1f7   :  { %v3910_v59 = vpop.f32.mrf.mxu0  ;;  %v3987_v14 = vpop.f32.mrf.mxu1 }
 0x1f8   :  { %3077 = vst.msk [vmem:[%s6614_s3 + $0x360] sm:$0xff] %vm628_vm2, %v1178_v36  ;;  %3181 = vst.msk [vmem:[%s6614_s3 + $0x4f0] sm:$0xff] %vm628_vm2, %v1842_v41  ;;  %v1193_v0 = vadd.f32 %v3910_v59, %v5564_v40  ;;  %v1857_v37 = vadd.f32 %v5650_v22, %v3987_v14 }
 0x1f9   :  { %v1187_v38 = vpop.f32.mrf.mxu0  ;;  %v1851_v47 = vpop.f32.mrf.mxu1 }
 0x1fa   :  { %3080 = vst.msk [vmem:[%s6614_s3 + $0x378] sm:$0xff] %vm628_vm2, %v1193_v0  ;;  %3184 = vst.msk [vmem:[%s6614_s3 + $0x508] sm:$0xff] %vm628_vm2, %v1857_v37  ;;  %v1188_v16 = vadd.f32 %v5564_v40, %v1187_v38  ;;  %v1852_v45 = vadd.f32 %v5650_v22, %v1851_v47 }
 0x1fb   :  { %v3913_v7 = vpop.f32.mrf.mxu0  ;;  %v3990_v26 = vpop.f32.mrf.mxu1 }
 0x1fc   :  { %3079 = vst.msk [vmem:[%s6614_s3 + $0x370] sm:$0xff] %vm628_vm2, %v1188_v16  ;;  %3183 = vst.msk [vmem:[%s6614_s3 + $0x500] sm:$0xff] %vm628_vm2, %v1852_v45  ;;  %v1203_v44 = vadd.f32 %v3913_v7, %v5564_v40  ;;  %v1867_v61 = vadd.f32 %v5650_v22, %v3990_v26 }
 0x1fd   :  { %v1197_v49 = vpop.f32.mrf.mxu0  ;;  %v1861_v10 = vpop.f32.mrf.mxu1 }
 0x1fe   :  { %3082 = vst.msk [vmem:[%s6614_s3 + $0x388] sm:$0xff] %vm628_vm2, %v1203_v44  ;;  %3186 = vst.msk [vmem:[%s6614_s3 + $0x518] sm:$0xff] %vm628_vm2, %v1867_v61  ;;  %v1198_v15 = vadd.f32 %v5564_v40, %v1197_v49  ;;  %v1862_v63 = vadd.f32 %v5650_v22, %v1861_v10 }
 0x1ff   :  { %v3916_v48 = vpop.f32.mrf.mxu0  ;;  %v3993_v28 = vpop.f32.mrf.mxu1 }
 0x200   :  { %3081 = vst.msk [vmem:[%s6614_s3 + $0x380] sm:$0xff] %vm628_vm2, %v1198_v15  ;;  %3185 = vst.msk [vmem:[%s6614_s3 + $0x510] sm:$0xff] %vm628_vm2, %v1862_v63  ;;  %v1213_v58 = vadd.f32 %v3916_v48, %v5564_v40  ;;  %v1877_v17 = vadd.f32 %v5650_v22, %v3993_v28 }
 0x201   :  { %v1207_v12 = vpop.f32.mrf.mxu0  ;;  %v1871_v34 = vpop.f32.mrf.mxu1 }
 0x202   :  { %3084 = vst.msk [vmem:[%s6614_s3 + $0x398] sm:$0xff] %vm628_vm2, %v1213_v58  ;;  %3188 = vst.msk [vmem:[%s6614_s3 + $0x528] sm:$0xff] %vm628_vm2, %v1877_v17  ;;  %v1208_v21 = vadd.f32 %v5564_v40, %v1207_v12  ;;  %v1872_v20 = vadd.f32 %v5650_v22, %v1871_v34 }
 0x203   :  { %v3919_v33 = vpop.f32.mrf.mxu0  ;;  %v3996_v9 = vpop.f32.mrf.mxu1 }
 0x204   :  { %3083 = vst.msk [vmem:[%s6614_s3 + $0x390] sm:$0xff] %vm628_vm2, %v1208_v21  ;;  %3187 = vst.msk [vmem:[%s6614_s3 + $0x520] sm:$0xff] %vm628_vm2, %v1872_v20  ;;  %v1223_v39 = vadd.f32 %v3919_v33, %v5564_v40  ;;  %v1887_v25 = vadd.f32 %v5650_v22, %v3996_v9 }
 0x205   :  { %v1217_v43 = vpop.f32.mrf.mxu0  ;;  %v1881_v29 = vpop.f32.mrf.mxu1 }
 0x206   :  { %3086 = vst.msk [vmem:[%s6614_s3 + $0x3a8] sm:$0xff] %vm628_vm2, %v1223_v39  ;;  %3190 = vst.msk [vmem:[%s6614_s3 + $0x538] sm:$0xff] %vm628_vm2, %v1887_v25  ;;  %v1218_v13 = vadd.f32 %v5564_v40, %v1217_v43  ;;  %v1882_v42 = vadd.f32 %v5650_v22, %v1881_v29 }
 0x207   :  { %v3922_v56 = vpop.f32.mrf.mxu0  ;;  %v3999_v51 = vpop.f32.mrf.mxu1 }
 0x208   :  { %3085 = vst.msk [vmem:[%s6614_s3 + $0x3a0] sm:$0xff] %vm628_vm2, %v1218_v13  ;;  %3189 = vst.msk [vmem:[%s6614_s3 + $0x530] sm:$0xff] %vm628_vm2, %v1882_v42  ;;  %v1233_v2 = vadd.f32 %v3922_v56, %v5564_v40  ;;  %v1897_v53 = vadd.f32 %v5650_v22, %v3999_v51 }
 0x209   :  { %v1227_v4 = vpop.f32.mrf.mxu0  ;;  %v1891_v11 = vpop.f32.mrf.mxu1 }
 0x20a   :  { %3088 = vst.msk [vmem:[%s6614_s3 + $0x3b8] sm:$0xff] %vm628_vm2, %v1233_v2  ;;  %3192 = vst.msk [vmem:[%s6614_s3 + $0x548] sm:$0xff] %vm628_vm2, %v1897_v53  ;;  %v1228_v19 = vadd.f32 %v5564_v40, %v1227_v4  ;;  %v1892_v18 = vadd.f32 %v5650_v22, %v1891_v11 }
 0x20b   :  { %v3925_v23 = vpop.f32.mrf.mxu0  ;;  %v4002_v55 = vpop.f32.mrf.mxu1 }
 0x20c   :  { %3087 = vst.msk [vmem:[%s6614_s3 + $0x3b0] sm:$0xff] %vm628_vm2, %v1228_v19  ;;  %3191 = vst.msk [vmem:[%s6614_s3 + $0x540] sm:$0xff] %vm628_vm2, %v1892_v18  ;;  %v1243_v57 = vadd.f32 %v3925_v23, %v5564_v40  ;;  %v1907_v46 = vadd.f32 %v5650_v22, %v4002_v55 }
 0x20d   :  { %v1237_v60 = vpop.f32.mrf.mxu0  ;;  %v1901_v31 = vpop.f32.mrf.mxu1 }
 0x20e   :  { %3090 = vst.msk [vmem:[%s6614_s3 + $0x3c8] sm:$0xff] %vm628_vm2, %v1243_v57  ;;  %3194 = vst.msk [vmem:[%s6614_s3 + $0x558] sm:$0xff] %vm628_vm2, %v1907_v46  ;;  %v1238_v27 = vadd.f32 %v5564_v40, %v1237_v60  ;;  %v1902_v62 = vadd.f32 %v5650_v22, %v1901_v31 }
 0x20f   :  { %v3928_v30 = vpop.f32.mrf.mxu0  ;;  %v4005_v5 = vpop.f32.mrf.mxu1 }
 0x210   :  { %3089 = vst.msk [vmem:[%s6614_s3 + $0x3c0] sm:$0xff] %vm628_vm2, %v1238_v27  ;;  %3193 = vst.msk [vmem:[%s6614_s3 + $0x550] sm:$0xff] %vm628_vm2, %v1902_v62  ;;  %v1253_v24 = vadd.f32 %v3928_v30, %v5564_v40  ;;  %v1917_v1 = vadd.f32 %v5650_v22, %v4005_v5 }
 0x211   :  { %v1247_v3 = vpop.f32.mrf.mxu0  ;;  %v1911_v35 = vpop.f32.mrf.mxu1 }
 0x212   :  { %3092 = vst.msk [vmem:[%s6614_s3 + $0x3d8] sm:$0xff] %vm628_vm2, %v1253_v24  ;;  %3196 = vst.msk [vmem:[%s6614_s3 + $0x568] sm:$0xff] %vm628_vm2, %v1917_v1  ;;  %v1248_v50 = vadd.f32 %v5564_v40, %v1247_v3  ;;  %v1912_v6 = vadd.f32 %v5650_v22, %v1911_v35 }
 0x213   :  { %v3931_v54 = vpop.f32.mrf.mxu0  ;;  %v4008_v52 = vpop.f32.mrf.mxu1 }
 0x214   :  { %3091 = vst.msk [vmem:[%s6614_s3 + $0x3d0] sm:$0xff] %vm628_vm2, %v1248_v50  ;;  %3195 = vst.msk [vmem:[%s6614_s3 + $0x560] sm:$0xff] %vm628_vm2, %v1912_v6  ;;  %v1263_v8 = vadd.f32 %v3931_v54, %v5564_v40  ;;  %v1927_v32 = vadd.f32 %v5650_v22, %v4008_v52 }
 0x215   :  { %v1257_v36 = vpop.f32.mrf.mxu0  ;;  %v1921_v41 = vpop.f32.mrf.mxu1 }
 0x216   :  { %3094 = vst.msk [vmem:[%s6614_s3 + $0x3e8] sm:$0xff] %vm628_vm2, %v1263_v8  ;;  %3198 = vst.msk [vmem:[%s6614_s3 + $0x578] sm:$0xff] %vm628_vm2, %v1927_v32  ;;  %v1258_v59 = vadd.f32 %v5564_v40, %v1257_v36  ;;  %v1922_v14 = vadd.f32 %v5650_v22, %v1921_v41 }
 0x217   :  { %v3934_v0 = vpop.f32.mrf.mxu0  ;;  %v4011_v37 = vpop.f32.mrf.mxu1 }
 0x218   :  { %3093 = vst.msk [vmem:[%s6614_s3 + $0x3e0] sm:$0xff] %vm628_vm2, %v1258_v59  ;;  %3197 = vst.msk [vmem:[%s6614_s3 + $0x570] sm:$0xff] %vm628_vm2, %v1922_v14  ;;  %v1273_v38 = vadd.f32 %v3934_v0, %v5564_v40  ;;  %v1937_v47 = vadd.f32 %v5650_v22, %v4011_v37 }
 0x219   :  { %v1267_v16 = vpop.f32.mrf.mxu0  ;;  %v1931_v45 = vpop.f32.mrf.mxu1 }
 0x21a   :  { %3096 = vst.msk [vmem:[%s6614_s3 + $0x3f8] sm:$0xff] %vm628_vm2, %v1273_v38  ;;  %3200 = vst.msk [vmem:[%s6614_s3 + $0x588] sm:$0xff] %vm628_vm2, %v1937_v47  ;;  %v1268_v7 = vadd.f32 %v5564_v40, %v1267_v16  ;;  %v1932_v26 = vadd.f32 %v5650_v22, %v1931_v45 }
 0x21b   :  { %v3937_v44 = vpop.f32.mrf.mxu0  ;;  %v4014_v61 = vpop.f32.mrf.mxu1 }
 0x21c   :  { %3095 = vst.msk [vmem:[%s6614_s3 + $0x3f0] sm:$0xff] %vm628_vm2, %v1268_v7  ;;  %3199 = vst.msk [vmem:[%s6614_s3 + $0x580] sm:$0xff] %vm628_vm2, %v1932_v26  ;;  %v1283_v49 = vadd.f32 %v3937_v44, %v5564_v40  ;;  %v1947_v10 = vadd.f32 %v5650_v22, %v4014_v61 }
 0x21d   :  { %v1277_v15 = vpop.f32.mrf.mxu0  ;;  %v1941_v63 = vpop.f32.mrf.mxu1 }
 0x21e   :  { %3098 = vst.msk [vmem:[%s6614_s3 + $0x408] sm:$0xff] %vm628_vm2, %v1283_v49  ;;  %3202 = vst.msk [vmem:[%s6614_s3 + $0x598] sm:$0xff] %vm628_vm2, %v1947_v10  ;;  %v1278_v48 = vadd.f32 %v5564_v40, %v1277_v15  ;;  %v1942_v28 = vadd.f32 %v5650_v22, %v1941_v63 }
 0x21f   :  { %v3940_v58 = vpop.f32.mrf.mxu0  ;;  %v4017_v17 = vpop.f32.mrf.mxu1 }
 0x220   :  { %3097 = vst.msk [vmem:[%s6614_s3 + $0x400] sm:$0xff] %vm628_vm2, %v1278_v48  ;;  %3201 = vst.msk [vmem:[%s6614_s3 + $0x590] sm:$0xff] %vm628_vm2, %v1942_v28  ;;  %v1293_v12 = vadd.f32 %v3940_v58, %v5564_v40  ;;  %v1957_v34 = vadd.f32 %v5650_v22, %v4017_v17 }
 0x221   :  { %v1287_v21 = vpop.f32.mrf.mxu0  ;;  %v1951_v20 = vpop.f32.mrf.mxu1 }
 0x222   :  { %3100 = vst.msk [vmem:[%s6614_s3 + $0x418] sm:$0xff] %vm628_vm2, %v1293_v12  ;;  %3204 = vst.msk [vmem:[%s6614_s3 + $0x5a8] sm:$0xff] %vm628_vm2, %v1957_v34  ;;  %v1288_v33 = vadd.f32 %v5564_v40, %v1287_v21  ;;  %v1952_v9 = vadd.f32 %v5650_v22, %v1951_v20 }
 0x223   :  { %v3943_v39 = vpop.f32.mrf.mxu0  ;;  %v4020_v25 = vpop.f32.mrf.mxu1 }
 0x224   :  { %3099 = vst.msk [vmem:[%s6614_s3 + $0x410] sm:$0xff] %vm628_vm2, %v1288_v33  ;;  %3203 = vst.msk [vmem:[%s6614_s3 + $0x5a0] sm:$0xff] %vm628_vm2, %v1952_v9  ;;  %v1303_v43 = vadd.f32 %v3943_v39, %v5564_v40  ;;  %v1967_v29 = vadd.f32 %v5650_v22, %v4020_v25 }
 0x225   :  { %v1297_v13 = vpop.f32.mrf.mxu0  ;;  %v1961_v42 = vpop.f32.mrf.mxu1 }
 0x226   :  { %3102 = vst.msk [vmem:[%s6614_s3 + $0x428] sm:$0xff] %vm628_vm2, %v1303_v43  ;;  %3206 = vst.msk [vmem:[%s6614_s3 + $0x5b8] sm:$0xff] %vm628_vm2, %v1967_v29  ;;  %v1298_v56 = vadd.f32 %v5564_v40, %v1297_v13  ;;  %v1962_v51 = vadd.f32 %v5650_v22, %v1961_v42 }
 0x227   :  { %v3946_v2 = vpop.f32.mrf.mxu0  ;;  %v4023_v53 = vpop.f32.mrf.mxu1 }
 0x228   :  { %3101 = vst.msk [vmem:[%s6614_s3 + $0x420] sm:$0xff] %vm628_vm2, %v1298_v56  ;;  %3205 = vst.msk [vmem:[%s6614_s3 + $0x5b0] sm:$0xff] %vm628_vm2, %v1962_v51  ;;  %v1313_v4 = vadd.f32 %v3946_v2, %v5564_v40  ;;  %v1977_v11 = vadd.f32 %v5650_v22, %v4023_v53  ;;  %v6086_v2 = vld [vmem:[%s6613_s2 + $0x1] ss:$0 sm:$0xff] }
 0x229   :  { %v1307_v19 = vpop.f32.mrf.mxu0  ;;  %v1971_v18 = vpop.f32.mrf.mxu1 }
 0x22a   :  { %3104 = vst.msk [vmem:[%s6614_s3 + $0x438] sm:$0xff] %vm628_vm2, %v1313_v4  ;;  %3208 = vst.msk [vmem:[%s6614_s3 + $0x5c8] sm:$0xff] %vm628_vm2, %v1977_v11  ;;  %v1308_v23 = vadd.f32 %v5564_v40, %v1307_v19  ;;  %v1972_v55 = vadd.f32 %v5650_v22, %v1971_v18 }
 0x22b   :  { %v3949_v57 = vpop.f32.mrf.mxu0  ;;  %v4026_v46 = vpop.f32.mrf.mxu1 }
 0x22c   :  { %3103 = vst.msk [vmem:[%s6614_s3 + $0x430] sm:$0xff] %vm628_vm2, %v1308_v23  ;;  %3207 = vst.msk [vmem:[%s6614_s3 + $0x5c0] sm:$0xff] %vm628_vm2, %v1972_v55  ;;  %v1323_v60 = vadd.f32 %v3949_v57, %v5564_v40  ;;  %v1987_v31 = vadd.f32 %v5650_v22, %v4026_v46 }
 0x22d   :  { %v1317_v27 = vpop.f32.mrf.mxu0  ;;  %v1981_v62 = vpop.f32.mrf.mxu1 }
 0x22e   :  { %3106 = vst.msk [vmem:[%s6614_s3 + $0x448] sm:$0xff] %vm628_vm2, %v1323_v60  ;;  %3210 = vst.msk [vmem:[%s6614_s3 + $0x5d8] sm:$0xff] %vm628_vm2, %v1987_v31  ;;  %v1318_v30 = vadd.f32 %v5564_v40, %v1317_v27  ;;  %v1982_v5 = vadd.f32 %v5650_v22, %v1981_v62 }
 0x22f   :  { %v3952_v24 = vpop.f32.mrf.mxu0  ;;  %v4029_v1 = vpop.f32.mrf.mxu1 }
 0x230   :  { %3105 = vst.msk [vmem:[%s6614_s3 + $0x440] sm:$0xff] %vm628_vm2, %v1318_v30  ;;  %3209 = vst.msk [vmem:[%s6614_s3 + $0x5d0] sm:$0xff] %vm628_vm2, %v1982_v5  ;;  %v1333_v3 = vadd.f32 %v3952_v24, %v5564_v40  ;;  %v1997_v35 = vadd.f32 %v5650_v22, %v4029_v1 }
 0x231   :  { %v1327_v50 = vpop.f32.mrf.mxu0  ;;  %v1991_v6 = vpop.f32.mrf.mxu1 }
 0x232   :  { %3108 = vst.msk [vmem:[%s6614_s3 + $0x458] sm:$0xff] %vm628_vm2, %v1333_v3  ;;  %3212 = vst.msk [vmem:[%s6614_s3 + $0x5e8] sm:$0xff] %vm628_vm2, %v1997_v35  ;;  %v1328_v54 = vadd.f32 %v5564_v40, %v1327_v50  ;;  %v1992_v52 = vadd.f32 %v5650_v22, %v1991_v6 }
 0x233   :  { %v3955_v8 = vpop.f32.mrf.mxu0  ;;  %v4032_v32 = vpop.f32.mrf.mxu1 }
 0x234   :  { %3107 = vst.msk [vmem:[%s6614_s3 + $0x450] sm:$0xff] %vm628_vm2, %v1328_v54  ;;  %3211 = vst.msk [vmem:[%s6614_s3 + $0x5e0] sm:$0xff] %vm628_vm2, %v1992_v52  ;;  %v1343_v36 = vadd.f32 %v3955_v8, %v5564_v40  ;;  %v2007_v41 = vadd.f32 %v5650_v22, %v4032_v32 }
 0x235   :  { %v1337_v59 = vpop.f32.mrf.mxu0  ;;  %v2001_v14 = vpop.f32.mrf.mxu1 }
 0x236   :  { %3110 = vst.msk [vmem:[%s6614_s3 + $0x468] sm:$0xff] %vm628_vm2, %v1343_v36  ;;  %3214 = vst.msk [vmem:[%s6614_s3 + $0x5f8] sm:$0xff] %vm628_vm2, %v2007_v41  ;;  %v1338_v0 = vadd.f32 %v5564_v40, %v1337_v59  ;;  %v2002_v37 = vadd.f32 %v5650_v22, %v2001_v14 }
 0x237   :  { %v3958_v38 = vpop.f32.mrf.mxu0  ;;  %v4035_v47 = vpop.f32.mrf.mxu1 }
 0x238   :  { %3109 = vst.msk [vmem:[%s6614_s3 + $0x460] sm:$0xff] %vm628_vm2, %v1338_v0  ;;  %3213 = vst.msk [vmem:[%s6614_s3 + $0x5f0] sm:$0xff] %vm628_vm2, %v2002_v37  ;;  %v1353_v16 = vadd.f32 %v3958_v38, %v5564_v40  ;;  %v2017_v45 = vadd.f32 %v5650_v22, %v4035_v47 }
 0x239   :  { %v1347_v7 = vpop.f32.mrf.mxu0  ;;  %v2011_v26 = vpop.f32.mrf.mxu1 }
 0x23a   :  { %3112 = vst.msk [vmem:[%s6614_s3 + $0x478] sm:$0xff] %vm628_vm2, %v1353_v16  ;;  %3216 = vst.msk [vmem:[%s6614_s3 + $0x608] sm:$0xff] %vm628_vm2, %v2017_v45  ;;  %v1348_v44 = vadd.f32 %v5564_v40, %v1347_v7  ;;  %v2012_v61 = vadd.f32 %v5650_v22, %v2011_v26 }
 0x23b   :  { %v3961_v49 = vpop.f32.mrf.mxu0  ;;  %v4038_v10 = vpop.f32.mrf.mxu1 }
 0x23c   :  { %3111 = vst.msk [vmem:[%s6614_s3 + $0x470] sm:$0xff] %vm628_vm2, %v1348_v44  ;;  %3215 = vst.msk [vmem:[%s6614_s3 + $0x600] sm:$0xff] %vm628_vm2, %v2012_v61  ;;  %v1363_v15 = vadd.f32 %v3961_v49, %v5564_v40  ;;  %v2027_v63 = vadd.f32 %v5650_v22, %v4038_v10 }
 0x23d   :  { %v1357_v48 = vpop.f32.mrf.mxu0  ;;  %v2021_v28 = vpop.f32.mrf.mxu1 }
 0x23e   :  { %3114 = vst.msk [vmem:[%s6614_s3 + $0x488] sm:$0xff] %vm628_vm2, %v1363_v15  ;;  %3218 = vst.msk [vmem:[%s6614_s3 + $0x618] sm:$0xff] %vm628_vm2, %v2027_v63  ;;  %v1358_v58 = vadd.f32 %v5564_v40, %v1357_v48  ;;  %v2022_v17 = vadd.f32 %v5650_v22, %v2021_v28 }
 0x23f   :  { %v3964_v12 = vpop.f32.mrf.mxu0  ;;  %v4041_v34 = vpop.f32.mrf.mxu1 }
 0x240   :  { %3113 = vst.msk [vmem:[%s6614_s3 + $0x480] sm:$0xff] %vm628_vm2, %v1358_v58  ;;  %3217 = vst.msk [vmem:[%s6614_s3 + $0x610] sm:$0xff] %vm628_vm2, %v2022_v17  ;;  %v1373_v21 = vadd.f32 %v3964_v12, %v5564_v40  ;;  %v2037_v20 = vadd.f32 %v5650_v22, %v4041_v34 }
 0x241   :  { %v1367_v33 = vpop.f32.mrf.mxu0  ;;  %v2031_v9 = vpop.f32.mrf.mxu1 }
 0x242   :  { %3116 = vst.msk [vmem:[%s6614_s3 + $0x498] sm:$0xff] %vm628_vm2, %v1373_v21  ;;  %3220 = vst.msk [vmem:[%s6614_s3 + $0x628] sm:$0xff] %vm628_vm2, %v2037_v20  ;;  %v1368_v39 = vadd.f32 %v5564_v40, %v1367_v33  ;;  %v2032_v25 = vadd.f32 %v5650_v22, %v2031_v9 }
 0x243   :  { %v3967_v43 = vpop.f32.mrf.mxu0  ;;  %v4044_v29 = vpop.f32.mrf.mxu1 }
 0x244   :  { %3115 = vst.msk [vmem:[%s6614_s3 + $0x490] sm:$0xff] %vm628_vm2, %v1368_v39  ;;  %3219 = vst.msk [vmem:[%s6614_s3 + $0x620] sm:$0xff] %vm628_vm2, %v2032_v25  ;;  %v1383_v13 = vadd.f32 %v3967_v43, %v5564_v40  ;;  %v2047_v42 = vadd.f32 %v5650_v22, %v4044_v29 }
 0x245   :  { %v1377_v56 = vpop.f32.mrf.mxu0  ;;  %v2041_v51 = vpop.f32.mrf.mxu1 }
 0x246   :  { %3118 = vst.msk [vmem:[%s6614_s3 + $0x4a8] sm:$0xff] %vm628_vm2, %v1383_v13  ;;  %3222 = vst.msk [vmem:[%s6614_s3 + $0x638] sm:$0xff] %vm628_vm2, %v2047_v42  ;;  %v1378_v53 = vadd.f32 %v5564_v40, %v1377_v56  ;;  %v2042_v4 = vadd.f32 %v5650_v22, %v2041_v51 }
 0x247   :  { %v4049_v11 = vpop.f32.mrf.mxu0  ;;  %v4126_v19 = vpop.f32.mrf.mxu1 }
 0x248   :  { %3117 = vst.msk [vmem:[%s6614_s3 + $0x4a0] sm:$0xff] %vm628_vm2, %v1378_v53  ;;  %3221 = vst.msk [vmem:[%s6614_s3 + $0x630] sm:$0xff] %vm628_vm2, %v2042_v4  ;;  %v2184_v18 = vadd.f32 %v4049_v11, %v6086_v2  ;;  %v2561_v23 = vadd.f32 %v4126_v19, %v5564_v40 }
 0x249   :  { %v2178_v55 = vpop.f32.mrf.mxu0  ;;  %v2555_v57 = vpop.f32.mrf.mxu1 }
 0x24a   :  { %3278 = vst.msk [vmem:[%s6614_s3 + $0x648] sm:$0xff] %vm628_vm2, %v2184_v18  ;;  %3382 = vst.msk [vmem:[%s6614_s3 + $0x7d8] sm:$0xff] %vm628_vm2, %v2561_v23  ;;  %v2179_v22 = vadd.f32 %v6086_v2, %v2178_v55  ;;  %v2556_v46 = vadd.f32 %v5564_v40, %v2555_v57 }
 0x24b   :  { %v4052_v60 = vpop.f32.mrf.mxu0  ;;  %v4129_v31 = vpop.f32.mrf.mxu1 }
 0x24c   :  { %3277 = vst.msk [vmem:[%s6614_s3 + $0x640] sm:$0xff] %vm628_vm2, %v2179_v22  ;;  %3381 = vst.msk [vmem:[%s6614_s3 + $0x7d0] sm:$0xff] %vm628_vm2, %v2556_v46  ;;  %v2194_v27 = vadd.f32 %v4052_v60, %v6086_v2  ;;  %v2571_v62 = vadd.f32 %v4129_v31, %v5564_v40 }
 0x24d   :  { %v2188_v30 = vpop.f32.mrf.mxu0  ;;  %v2565_v5 = vpop.f32.mrf.mxu1 }
 0x24e   :  { %3280 = vst.msk [vmem:[%s6614_s3 + $0x658] sm:$0xff] %vm628_vm2, %v2194_v27  ;;  %3384 = vst.msk [vmem:[%s6614_s3 + $0x7e8] sm:$0xff] %vm628_vm2, %v2571_v62  ;;  %v2189_v24 = vadd.f32 %v6086_v2, %v2188_v30  ;;  %v2566_v1 = vadd.f32 %v5564_v40, %v2565_v5 }
 0x24f   :  { %v4055_v3 = vpop.f32.mrf.mxu0  ;;  %v4132_v35 = vpop.f32.mrf.mxu1 }
 0x250   :  { %3279 = vst.msk [vmem:[%s6614_s3 + $0x650] sm:$0xff] %vm628_vm2, %v2189_v24  ;;  %3383 = vst.msk [vmem:[%s6614_s3 + $0x7e0] sm:$0xff] %vm628_vm2, %v2566_v1  ;;  %v2204_v50 = vadd.f32 %v4055_v3, %v6086_v2  ;;  %v2581_v6 = vadd.f32 %v4132_v35, %v5564_v40 }
 0x251   :  { %v2198_v54 = vpop.f32.mrf.mxu0  ;;  %v2575_v52 = vpop.f32.mrf.mxu1 }
 0x252   :  { %3282 = vst.msk [vmem:[%s6614_s3 + $0x668] sm:$0xff] %vm628_vm2, %v2204_v50  ;;  %3386 = vst.msk [vmem:[%s6614_s3 + $0x7f8] sm:$0xff] %vm628_vm2, %v2581_v6  ;;  %v2199_v8 = vadd.f32 %v6086_v2, %v2198_v54  ;;  %v2576_v32 = vadd.f32 %v5564_v40, %v2575_v52 }
 0x253   :  { %v4058_v36 = vpop.f32.mrf.mxu0  ;;  %v4135_v41 = vpop.f32.mrf.mxu1 }
 0x254   :  { %3281 = vst.msk [vmem:[%s6614_s3 + $0x660] sm:$0xff] %vm628_vm2, %v2199_v8  ;;  %3385 = vst.msk [vmem:[%s6614_s3 + $0x7f0] sm:$0xff] %vm628_vm2, %v2576_v32  ;;  %v2214_v59 = vadd.f32 %v4058_v36, %v6086_v2  ;;  %v2591_v14 = vadd.f32 %v4135_v41, %v5564_v40 }
 0x255   :  { %v2208_v0 = vpop.f32.mrf.mxu0  ;;  %v2585_v37 = vpop.f32.mrf.mxu1 }
 0x256   :  { %3284 = vst.msk [vmem:[%s6614_s3 + $0x678] sm:$0xff] %vm628_vm2, %v2214_v59  ;;  %3388 = vst.msk [vmem:[%s6614_s3 + $0x808] sm:$0xff] %vm628_vm2, %v2591_v14  ;;  %v2209_v38 = vadd.f32 %v6086_v2, %v2208_v0  ;;  %v2586_v47 = vadd.f32 %v5564_v40, %v2585_v37 }
 0x257   :  { %v4061_v16 = vpop.f32.mrf.mxu0  ;;  %v4138_v45 = vpop.f32.mrf.mxu1 }
 0x258   :  { %3283 = vst.msk [vmem:[%s6614_s3 + $0x670] sm:$0xff] %vm628_vm2, %v2209_v38  ;;  %3387 = vst.msk [vmem:[%s6614_s3 + $0x800] sm:$0xff] %vm628_vm2, %v2586_v47  ;;  %v2224_v7 = vadd.f32 %v4061_v16, %v6086_v2  ;;  %v2601_v26 = vadd.f32 %v4138_v45, %v5564_v40 }
 0x259   :  { %v2218_v44 = vpop.f32.mrf.mxu0  ;;  %v2595_v61 = vpop.f32.mrf.mxu1 }
 0x25a   :  { %3286 = vst.msk [vmem:[%s6614_s3 + $0x688] sm:$0xff] %vm628_vm2, %v2224_v7  ;;  %3390 = vst.msk [vmem:[%s6614_s3 + $0x818] sm:$0xff] %vm628_vm2, %v2601_v26  ;;  %v2219_v49 = vadd.f32 %v6086_v2, %v2218_v44  ;;  %v2596_v10 = vadd.f32 %v5564_v40, %v2595_v61 }
 0x25b   :  { %v4064_v15 = vpop.f32.mrf.mxu0  ;;  %v4141_v63 = vpop.f32.mrf.mxu1 }
 0x25c   :  { %3285 = vst.msk [vmem:[%s6614_s3 + $0x680] sm:$0xff] %vm628_vm2, %v2219_v49  ;;  %3389 = vst.msk [vmem:[%s6614_s3 + $0x810] sm:$0xff] %vm628_vm2, %v2596_v10  ;;  %v2234_v48 = vadd.f32 %v4064_v15, %v6086_v2  ;;  %v2611_v28 = vadd.f32 %v4141_v63, %v5564_v40 }
 0x25d   :  { %v2228_v58 = vpop.f32.mrf.mxu0  ;;  %v2605_v17 = vpop.f32.mrf.mxu1 }
 0x25e   :  { %3288 = vst.msk [vmem:[%s6614_s3 + $0x698] sm:$0xff] %vm628_vm2, %v2234_v48  ;;  %3392 = vst.msk [vmem:[%s6614_s3 + $0x828] sm:$0xff] %vm628_vm2, %v2611_v28  ;;  %v2229_v12 = vadd.f32 %v6086_v2, %v2228_v58  ;;  %v2606_v34 = vadd.f32 %v5564_v40, %v2605_v17 }
 0x25f   :  { %v4067_v21 = vpop.f32.mrf.mxu0  ;;  %v4144_v20 = vpop.f32.mrf.mxu1 }
 0x260   :  { %3287 = vst.msk [vmem:[%s6614_s3 + $0x690] sm:$0xff] %vm628_vm2, %v2229_v12  ;;  %3391 = vst.msk [vmem:[%s6614_s3 + $0x820] sm:$0xff] %vm628_vm2, %v2606_v34  ;;  %v2244_v33 = vadd.f32 %v4067_v21, %v6086_v2  ;;  %v2621_v9 = vadd.f32 %v4144_v20, %v5564_v40 }
 0x261   :  { %v2238_v39 = vpop.f32.mrf.mxu0  ;;  %v2615_v25 = vpop.f32.mrf.mxu1 }
 0x262   :  { %3290 = vst.msk [vmem:[%s6614_s3 + $0x6a8] sm:$0xff] %vm628_vm2, %v2244_v33  ;;  %3394 = vst.msk [vmem:[%s6614_s3 + $0x838] sm:$0xff] %vm628_vm2, %v2621_v9  ;;  %v2239_v43 = vadd.f32 %v6086_v2, %v2238_v39  ;;  %v2616_v29 = vadd.f32 %v5564_v40, %v2615_v25 }
 0x263   :  { %v4070_v13 = vpop.f32.mrf.mxu0  ;;  %v4147_v42 = vpop.f32.mrf.mxu1 }
 0x264   :  { %3289 = vst.msk [vmem:[%s6614_s3 + $0x6a0] sm:$0xff] %vm628_vm2, %v2239_v43  ;;  %3393 = vst.msk [vmem:[%s6614_s3 + $0x830] sm:$0xff] %vm628_vm2, %v2616_v29  ;;  %v2254_v56 = vadd.f32 %v4070_v13, %v6086_v2  ;;  %v2631_v51 = vadd.f32 %v4147_v42, %v5564_v40 }
 0x265   :  { %v2248_v53 = vpop.f32.mrf.mxu0  ;;  %v2625_v4 = vpop.f32.mrf.mxu1 }
 0x266   :  { %3292 = vst.msk [vmem:[%s6614_s3 + $0x6b8] sm:$0xff] %vm628_vm2, %v2254_v56  ;;  %3396 = vst.msk [vmem:[%s6614_s3 + $0x848] sm:$0xff] %vm628_vm2, %v2631_v51  ;;  %v2249_v11 = vadd.f32 %v6086_v2, %v2248_v53  ;;  %v2626_v19 = vadd.f32 %v5564_v40, %v2625_v4 }
 0x267   :  { %v4073_v18 = vpop.f32.mrf.mxu0  ;;  %v4150_v23 = vpop.f32.mrf.mxu1 }
 0x268   :  { %3291 = vst.msk [vmem:[%s6614_s3 + $0x6b0] sm:$0xff] %vm628_vm2, %v2249_v11  ;;  %3395 = vst.msk [vmem:[%s6614_s3 + $0x840] sm:$0xff] %vm628_vm2, %v2626_v19  ;;  %v2264_v55 = vadd.f32 %v4073_v18, %v6086_v2  ;;  %v2641_v57 = vadd.f32 %v4150_v23, %v5564_v40 }
 0x269   :  { %v2258_v22 = vpop.f32.mrf.mxu0  ;;  %v2635_v46 = vpop.f32.mrf.mxu1 }
 0x26a   :  { %3294 = vst.msk [vmem:[%s6614_s3 + $0x6c8] sm:$0xff] %vm628_vm2, %v2264_v55  ;;  %3398 = vst.msk [vmem:[%s6614_s3 + $0x858] sm:$0xff] %vm628_vm2, %v2641_v57  ;;  %v2259_v60 = vadd.f32 %v6086_v2, %v2258_v22  ;;  %v2636_v31 = vadd.f32 %v5564_v40, %v2635_v46 }
 0x26b   :  { %v4076_v27 = vpop.f32.mrf.mxu0  ;;  %v4153_v62 = vpop.f32.mrf.mxu1 }
 0x26c   :  { %3293 = vst.msk [vmem:[%s6614_s3 + $0x6c0] sm:$0xff] %vm628_vm2, %v2259_v60  ;;  %3397 = vst.msk [vmem:[%s6614_s3 + $0x850] sm:$0xff] %vm628_vm2, %v2636_v31  ;;  %v2274_v30 = vadd.f32 %v4076_v27, %v6086_v2  ;;  %v2651_v5 = vadd.f32 %v4153_v62, %v5564_v40  ;;  %v6440_v62 = vld [vmem:[%s6613_s2 + $0x2] ss:$0 sm:$0xff] }
 0x26d   :  { %v2268_v24 = vpop.f32.mrf.mxu0  ;;  %v2645_v1 = vpop.f32.mrf.mxu1 }
 0x26e   :  { %3296 = vst.msk [vmem:[%s6614_s3 + $0x6d8] sm:$0xff] %vm628_vm2, %v2274_v30  ;;  %3400 = vst.msk [vmem:[%s6614_s3 + $0x868] sm:$0xff] %vm628_vm2, %v2651_v5  ;;  %v2269_v3 = vadd.f32 %v6086_v2, %v2268_v24  ;;  %v2646_v35 = vadd.f32 %v5564_v40, %v2645_v1 }
 0x26f   :  { %v4079_v50 = vpop.f32.mrf.mxu0  ;;  %v4156_v6 = vpop.f32.mrf.mxu1 }
 0x270   :  { %3295 = vst.msk [vmem:[%s6614_s3 + $0x6d0] sm:$0xff] %vm628_vm2, %v2269_v3  ;;  %3399 = vst.msk [vmem:[%s6614_s3 + $0x860] sm:$0xff] %vm628_vm2, %v2646_v35  ;;  %v2284_v54 = vadd.f32 %v4079_v50, %v6086_v2  ;;  %v2661_v52 = vadd.f32 %v4156_v6, %v5564_v40 }
 0x271   :  { %v2278_v8 = vpop.f32.mrf.mxu0  ;;  %v2655_v32 = vpop.f32.mrf.mxu1 }
 0x272   :  { %3298 = vst.msk [vmem:[%s6614_s3 + $0x6e8] sm:$0xff] %vm628_vm2, %v2284_v54  ;;  %3402 = vst.msk [vmem:[%s6614_s3 + $0x878] sm:$0xff] %vm628_vm2, %v2661_v52  ;;  %v2279_v36 = vadd.f32 %v6086_v2, %v2278_v8  ;;  %v2656_v41 = vadd.f32 %v5564_v40, %v2655_v32 }
 0x273   :  { %v4082_v59 = vpop.f32.mrf.mxu0  ;;  %v4159_v14 = vpop.f32.mrf.mxu1 }
 0x274   :  { %3297 = vst.msk [vmem:[%s6614_s3 + $0x6e0] sm:$0xff] %vm628_vm2, %v2279_v36  ;;  %3401 = vst.msk [vmem:[%s6614_s3 + $0x870] sm:$0xff] %vm628_vm2, %v2656_v41  ;;  %v2294_v0 = vadd.f32 %v4082_v59, %v6086_v2  ;;  %v2671_v37 = vadd.f32 %v4159_v14, %v5564_v40 }
 0x275   :  { %v2288_v38 = vpop.f32.mrf.mxu0  ;;  %v2665_v47 = vpop.f32.mrf.mxu1 }
 0x276   :  { %3300 = vst.msk [vmem:[%s6614_s3 + $0x6f8] sm:$0xff] %vm628_vm2, %v2294_v0  ;;  %3404 = vst.msk [vmem:[%s6614_s3 + $0x888] sm:$0xff] %vm628_vm2, %v2671_v37  ;;  %v2289_v16 = vadd.f32 %v6086_v2, %v2288_v38  ;;  %v2666_v45 = vadd.f32 %v5564_v40, %v2665_v47 }
 0x277   :  { %v4085_v7 = vpop.f32.mrf.mxu0  ;;  %v4162_v26 = vpop.f32.mrf.mxu1 }
 0x278   :  { %3299 = vst.msk [vmem:[%s6614_s3 + $0x6f0] sm:$0xff] %vm628_vm2, %v2289_v16  ;;  %3403 = vst.msk [vmem:[%s6614_s3 + $0x880] sm:$0xff] %vm628_vm2, %v2666_v45  ;;  %v2304_v44 = vadd.f32 %v4085_v7, %v6086_v2  ;;  %v2681_v61 = vadd.f32 %v4162_v26, %v5564_v40 }
 0x279   :  { %v2298_v49 = vpop.f32.mrf.mxu0  ;;  %v2675_v10 = vpop.f32.mrf.mxu1 }
 0x27a   :  { %3302 = vst.msk [vmem:[%s6614_s3 + $0x708] sm:$0xff] %vm628_vm2, %v2304_v44  ;;  %3406 = vst.msk [vmem:[%s6614_s3 + $0x898] sm:$0xff] %vm628_vm2, %v2681_v61  ;;  %v2299_v15 = vadd.f32 %v6086_v2, %v2298_v49  ;;  %v2676_v63 = vadd.f32 %v5564_v40, %v2675_v10 }
 0x27b   :  { %v4088_v48 = vpop.f32.mrf.mxu0  ;;  %v4165_v28 = vpop.f32.mrf.mxu1 }
 0x27c   :  { %3301 = vst.msk [vmem:[%s6614_s3 + $0x700] sm:$0xff] %vm628_vm2, %v2299_v15  ;;  %3405 = vst.msk [vmem:[%s6614_s3 + $0x890] sm:$0xff] %vm628_vm2, %v2676_v63  ;;  %v2314_v58 = vadd.f32 %v4088_v48, %v6086_v2  ;;  %v2691_v17 = vadd.f32 %v4165_v28, %v5564_v40 }
 0x27d   :  { %v2308_v12 = vpop.f32.mrf.mxu0  ;;  %v2685_v34 = vpop.f32.mrf.mxu1 }
 0x27e   :  { %3304 = vst.msk [vmem:[%s6614_s3 + $0x718] sm:$0xff] %vm628_vm2, %v2314_v58  ;;  %3408 = vst.msk [vmem:[%s6614_s3 + $0x8a8] sm:$0xff] %vm628_vm2, %v2691_v17  ;;  %v2309_v21 = vadd.f32 %v6086_v2, %v2308_v12  ;;  %v2686_v20 = vadd.f32 %v5564_v40, %v2685_v34 }
 0x27f   :  { %v4091_v33 = vpop.f32.mrf.mxu0  ;;  %v4168_v9 = vpop.f32.mrf.mxu1 }
 0x280   :  { %3303 = vst.msk [vmem:[%s6614_s3 + $0x710] sm:$0xff] %vm628_vm2, %v2309_v21  ;;  %3407 = vst.msk [vmem:[%s6614_s3 + $0x8a0] sm:$0xff] %vm628_vm2, %v2686_v20  ;;  %v2324_v39 = vadd.f32 %v4091_v33, %v6086_v2  ;;  %v2701_v25 = vadd.f32 %v4168_v9, %v5564_v40 }
 0x281   :  { %v2318_v43 = vpop.f32.mrf.mxu0  ;;  %v2695_v29 = vpop.f32.mrf.mxu1 }
 0x282   :  { %3306 = vst.msk [vmem:[%s6614_s3 + $0x728] sm:$0xff] %vm628_vm2, %v2324_v39  ;;  %3410 = vst.msk [vmem:[%s6614_s3 + $0x8b8] sm:$0xff] %vm628_vm2, %v2701_v25  ;;  %v2319_v13 = vadd.f32 %v6086_v2, %v2318_v43  ;;  %v2696_v42 = vadd.f32 %v5564_v40, %v2695_v29 }
 0x283   :  { %v4094_v56 = vpop.f32.mrf.mxu0  ;;  %v4171_v51 = vpop.f32.mrf.mxu1 }
 0x284   :  { %3305 = vst.msk [vmem:[%s6614_s3 + $0x720] sm:$0xff] %vm628_vm2, %v2319_v13  ;;  %3409 = vst.msk [vmem:[%s6614_s3 + $0x8b0] sm:$0xff] %vm628_vm2, %v2696_v42  ;;  %v2334_v53 = vadd.f32 %v4094_v56, %v6086_v2  ;;  %v2711_v4 = vadd.f32 %v4171_v51, %v5564_v40 }
 0x285   :  { %v2328_v11 = vpop.f32.mrf.mxu0  ;;  %v2705_v19 = vpop.f32.mrf.mxu1 }
 0x286   :  { %3308 = vst.msk [vmem:[%s6614_s3 + $0x738] sm:$0xff] %vm628_vm2, %v2334_v53  ;;  %3412 = vst.msk [vmem:[%s6614_s3 + $0x8c8] sm:$0xff] %vm628_vm2, %v2711_v4  ;;  %v2329_v18 = vadd.f32 %v6086_v2, %v2328_v11  ;;  %v2706_v23 = vadd.f32 %v5564_v40, %v2705_v19 }
 0x287   :  { %v4097_v55 = vpop.f32.mrf.mxu0  ;;  %v4174_v57 = vpop.f32.mrf.mxu1 }
 0x288   :  { %3307 = vst.msk [vmem:[%s6614_s3 + $0x730] sm:$0xff] %vm628_vm2, %v2329_v18  ;;  %3411 = vst.msk [vmem:[%s6614_s3 + $0x8c0] sm:$0xff] %vm628_vm2, %v2706_v23  ;;  %v2344_v22 = vadd.f32 %v4097_v55, %v6086_v2  ;;  %v2721_v46 = vadd.f32 %v4174_v57, %v5564_v40 }
 0x289   :  { %v2338_v60 = vpop.f32.mrf.mxu0  ;;  %v2715_v31 = vpop.f32.mrf.mxu1 }
 0x28a   :  { %3310 = vst.msk [vmem:[%s6614_s3 + $0x748] sm:$0xff] %vm628_vm2, %v2344_v22  ;;  %3414 = vst.msk [vmem:[%s6614_s3 + $0x8d8] sm:$0xff] %vm628_vm2, %v2721_v46  ;;  %v2339_v27 = vadd.f32 %v6086_v2, %v2338_v60  ;;  %v2716_v40 = vadd.f32 %v6440_v62, %v2715_v31 }
 0x28b   :  { %v4100_v30 = vpop.f32.mrf.mxu0  ;;  %v4177_v5 = vpop.f32.mrf.mxu1 }
 0x28c   :  { %3309 = vst.msk [vmem:[%s6614_s3 + $0x740] sm:$0xff] %vm628_vm2, %v2339_v27  ;;  %3413 = vst.msk [vmem:[%s6614_s3 + $0x8d0] sm:$0xff] %vm628_vm2, %v2716_v40  ;;  %v2354_v24 = vadd.f32 %v4100_v30, %v6086_v2  ;;  %v2731_v1 = vadd.f32 %v6440_v62, %v4177_v5 }
 0x28d   :  { %v2348_v3 = vpop.f32.mrf.mxu0  ;;  %v2725_v35 = vpop.f32.mrf.mxu1 }
 0x28e   :  { %3312 = vst.msk [vmem:[%s6614_s3 + $0x758] sm:$0xff] %vm628_vm2, %v2354_v24  ;;  %3416 = vst.msk [vmem:[%s6614_s3 + $0x8e8] sm:$0xff] %vm628_vm2, %v2731_v1  ;;  %v2349_v50 = vadd.f32 %v6086_v2, %v2348_v3  ;;  %v2726_v6 = vadd.f32 %v6440_v62, %v2725_v35 }
 0x28f   :  { %v4103_v54 = vpop.f32.mrf.mxu0  ;;  %v4180_v52 = vpop.f32.mrf.mxu1 }
 0x290   :  { %3311 = vst.msk [vmem:[%s6614_s3 + $0x750] sm:$0xff] %vm628_vm2, %v2349_v50  ;;  %3415 = vst.msk [vmem:[%s6614_s3 + $0x8e0] sm:$0xff] %vm628_vm2, %v2726_v6  ;;  %v2364_v8 = vadd.f32 %v4103_v54, %v6086_v2  ;;  %v2741_v32 = vadd.f32 %v6440_v62, %v4180_v52 }
 0x291   :  { %v2358_v36 = vpop.f32.mrf.mxu0  ;;  %v2735_v41 = vpop.f32.mrf.mxu1 }
 0x292   :  { %3314 = vst.msk [vmem:[%s6614_s3 + $0x768] sm:$0xff] %vm628_vm2, %v2364_v8  ;;  %3418 = vst.msk [vmem:[%s6614_s3 + $0x8f8] sm:$0xff] %vm628_vm2, %v2741_v32  ;;  %v2359_v59 = vadd.f32 %v6086_v2, %v2358_v36  ;;  %v2736_v14 = vadd.f32 %v6440_v62, %v2735_v41 }
 0x293   :  { %v4106_v0 = vpop.f32.mrf.mxu0  ;;  %v4183_v37 = vpop.f32.mrf.mxu1 }
 0x294   :  { %3313 = vst.msk [vmem:[%s6614_s3 + $0x760] sm:$0xff] %vm628_vm2, %v2359_v59  ;;  %3417 = vst.msk [vmem:[%s6614_s3 + $0x8f0] sm:$0xff] %vm628_vm2, %v2736_v14  ;;  %v2374_v38 = vadd.f32 %v4106_v0, %v6086_v2  ;;  %v2751_v47 = vadd.f32 %v6440_v62, %v4183_v37 }
 0x295   :  { %v2368_v16 = vpop.f32.mrf.mxu0  ;;  %v2745_v45 = vpop.f32.mrf.mxu1 }
 0x296   :  { %3316 = vst.msk [vmem:[%s6614_s3 + $0x778] sm:$0xff] %vm628_vm2, %v2374_v38  ;;  %3420 = vst.msk [vmem:[%s6614_s3 + $0x908] sm:$0xff] %vm628_vm2, %v2751_v47  ;;  %v2369_v7 = vadd.f32 %v6086_v2, %v2368_v16  ;;  %v2746_v26 = vadd.f32 %v6440_v62, %v2745_v45 }
 0x297   :  { %v4109_v44 = vpop.f32.mrf.mxu0  ;;  %v4186_v61 = vpop.f32.mrf.mxu1 }
 0x298   :  { %3315 = vst.msk [vmem:[%s6614_s3 + $0x770] sm:$0xff] %vm628_vm2, %v2369_v7  ;;  %3419 = vst.msk [vmem:[%s6614_s3 + $0x900] sm:$0xff] %vm628_vm2, %v2746_v26  ;;  %v2384_v49 = vadd.f32 %v4109_v44, %v6086_v2  ;;  %v2761_v10 = vadd.f32 %v6440_v62, %v4186_v61 }
 0x299   :  { %v2378_v15 = vpop.f32.mrf.mxu0  ;;  %v2755_v63 = vpop.f32.mrf.mxu1 }
 0x29a   :  { %3318 = vst.msk [vmem:[%s6614_s3 + $0x788] sm:$0xff] %vm628_vm2, %v2384_v49  ;;  %3422 = vst.msk [vmem:[%s6614_s3 + $0x918] sm:$0xff] %vm628_vm2, %v2761_v10  ;;  %v2379_v48 = vadd.f32 %v6086_v2, %v2378_v15  ;;  %v2756_v28 = vadd.f32 %v6440_v62, %v2755_v63 }
 0x29b   :  { %v4112_v58 = vpop.f32.mrf.mxu0  ;;  %v4189_v17 = vpop.f32.mrf.mxu1 }
 0x29c   :  { %3317 = vst.msk [vmem:[%s6614_s3 + $0x780] sm:$0xff] %vm628_vm2, %v2379_v48  ;;  %3421 = vst.msk [vmem:[%s6614_s3 + $0x910] sm:$0xff] %vm628_vm2, %v2756_v28  ;;  %v2394_v12 = vadd.f32 %v4112_v58, %v6086_v2  ;;  %v2771_v34 = vadd.f32 %v6440_v62, %v4189_v17 }
 0x29d   :  { %v2388_v21 = vpop.f32.mrf.mxu0  ;;  %v2765_v20 = vpop.f32.mrf.mxu1 }
 0x29e   :  { %3320 = vst.msk [vmem:[%s6614_s3 + $0x798] sm:$0xff] %vm628_vm2, %v2394_v12  ;;  %3424 = vst.msk [vmem:[%s6614_s3 + $0x928] sm:$0xff] %vm628_vm2, %v2771_v34  ;;  %v2389_v33 = vadd.f32 %v6086_v2, %v2388_v21  ;;  %v2766_v9 = vadd.f32 %v6440_v62, %v2765_v20 }
 0x29f   :  { %v4115_v39 = vpop.f32.mrf.mxu0  ;;  %v4192_v25 = vpop.f32.mrf.mxu1 }
 0x2a0   :  { %3319 = vst.msk [vmem:[%s6614_s3 + $0x790] sm:$0xff] %vm628_vm2, %v2389_v33  ;;  %3423 = vst.msk [vmem:[%s6614_s3 + $0x920] sm:$0xff] %vm628_vm2, %v2766_v9  ;;  %v2404_v43 = vadd.f32 %v4115_v39, %v6086_v2  ;;  %v2781_v29 = vadd.f32 %v6440_v62, %v4192_v25 }
 0x2a1   :  { %v2398_v13 = vpop.f32.mrf.mxu0  ;;  %v2775_v42 = vpop.f32.mrf.mxu1 }
 0x2a2   :  { %3322 = vst.msk [vmem:[%s6614_s3 + $0x7a8] sm:$0xff] %vm628_vm2, %v2404_v43  ;;  %3426 = vst.msk [vmem:[%s6614_s3 + $0x938] sm:$0xff] %vm628_vm2, %v2781_v29  ;;  %v2399_v56 = vadd.f32 %v6086_v2, %v2398_v13  ;;  %v2776_v51 = vadd.f32 %v6440_v62, %v2775_v42 }
 0x2a3   :  { %v4118_v53 = vpop.f32.mrf.mxu0  ;;  %v4195_v4 = vpop.f32.mrf.mxu1 }
 0x2a4   :  { %3321 = vst.msk [vmem:[%s6614_s3 + $0x7a0] sm:$0xff] %vm628_vm2, %v2399_v56  ;;  %3425 = vst.msk [vmem:[%s6614_s3 + $0x930] sm:$0xff] %vm628_vm2, %v2776_v51  ;;  %v2414_v11 = vadd.f32 %v4118_v53, %v6086_v2  ;;  %v2791_v19 = vadd.f32 %v6440_v62, %v4195_v4 }
 0x2a5   :  { %v2408_v18 = vpop.f32.mrf.mxu0  ;;  %v2785_v23 = vpop.f32.mrf.mxu1 }
 0x2a6   :  { %3324 = vst.msk [vmem:[%s6614_s3 + $0x7b8] sm:$0xff] %vm628_vm2, %v2414_v11  ;;  %3428 = vst.msk [vmem:[%s6614_s3 + $0x948] sm:$0xff] %vm628_vm2, %v2791_v19  ;;  %v2409_v55 = vadd.f32 %v6086_v2, %v2408_v18  ;;  %v2786_v57 = vadd.f32 %v6440_v62, %v2785_v23 }
 0x2a7   :  { %v4121_v22 = vpop.f32.mrf.mxu0  ;;  %v4198_v46 = vpop.f32.mrf.mxu1 }
 0x2a8   :  { %3323 = vst.msk [vmem:[%s6614_s3 + $0x7b0] sm:$0xff] %vm628_vm2, %v2409_v55  ;;  %3427 = vst.msk [vmem:[%s6614_s3 + $0x940] sm:$0xff] %vm628_vm2, %v2786_v57  ;;  %v2424_v60 = vadd.f32 %v4121_v22, %v6086_v2  ;;  %v2801_v31 = vadd.f32 %v6440_v62, %v4198_v46 }
 0x2a9   :  { %v2418_v27 = vpop.f32.mrf.mxu0  ;;  %v2795_v40 = vpop.f32.mrf.mxu1 }
 0x2aa   :  { %3326 = vst.msk [vmem:[%s6614_s3 + $0x7c8] sm:$0xff] %vm628_vm2, %v2424_v60  ;;  %3430 = vst.msk [vmem:[%s6614_s3 + $0x958] sm:$0xff] %vm628_vm2, %v2801_v31  ;;  %v2419_v30 = vadd.f32 %v6086_v2, %v2418_v27  ;;  %v2796_v5 = vadd.f32 %v6440_v62, %v2795_v40 }
 0x2ac   :  { %3325 = vst.msk [vmem:[%s6614_s3 + $0x7c0] sm:$0xff] %vm628_vm2, %v2419_v30  ;;  %3429 = vst.msk [vmem:[%s6614_s3 + $0x950] sm:$0xff] %vm628_vm2, %v2796_v5 }

</bundles_post_ra>
